<compile_context>
chip_gen: v6e
topology: v6e:2x2x1
jax: 0.10.0
libtpu: 0.0.40
codegen_flags: <defaults>
</compile_context>

<pallas_src>
import functools

import jax
import jax.numpy as jnp
from jax import lax
from jax.experimental import pallas as pl
from jax.experimental.pallas import tpu as pltpu

COMPUTE_DTYPE = jnp.bfloat16   # MXU operand dtype; accumulation & elementwise stay f32


def _round_up(x, m):
    return ((x + m - 1) // m) * m


# ----------------------------------------------------------------------------
# Pallas kernel: one (t_block, b_block) chunk of one LSTM layer
# (optionally fused with the linear head for the last layer).
# ----------------------------------------------------------------------------
def _lstm_layer_kernel(*refs, hidden, t_block, b_block, compute_dtype, fuse_fc):
    if fuse_fc:
        (x_ref, wih_ref, whh_ref, b_ref, h0_ref, c0_ref, fcw_ref, fcb_ref,
         o_ref, h_scr, c_scr, gx_scr, hbuf) = refs
    else:
        (x_ref, wih_ref, whh_ref, b_ref, h0_ref, c0_ref,
         o_ref, h_scr, c_scr, gx_scr, hbuf) = refs

    Hp = hidden

    # Grid = (batch_blocks, time_blocks); time axis is 'arbitrary', h/c state is
    # carried in VMEM scratch across time blocks and reset at the first block.
    @pl.when(pl.program_id(1) == 0)
    def _():
        h_scr[...] = jnp.broadcast_to(h0_ref[...], (b_block, Hp))
        c_scr[...] = jnp.broadcast_to(c0_ref[...], (b_block, Hp))

    # Hoisted input projection (+ bias fold): one chunk-wide MXU matmul.
    x2d = x_ref[...].reshape(t_block * b_block, -1).astype(compute_dtype)
    gx_scr[...] = (jnp.dot(x2d, wih_ref[...], preferred_element_type=jnp.float32)
                   + b_ref[...])                       # (Tt*Bb, 4Hp), f32

    def step(t, carry):
        # Only the recurrent matmul stays on the serial critical path.
        row0 = pl.multiple_of(t * b_block, b_block)    # sublane-aligned slice
        gates = (jnp.dot(h_scr[...].astype(compute_dtype), whh_ref[...],
                         preferred_element_type=jnp.float32)
                 + gx_scr[pl.ds(row0, b_block), :])    # (Bb, 4Hp)
        i_g = jax.nn.sigmoid(gates[:, 0:Hp])           # lane-aligned gate slices
        f_g = jax.nn.sigmoid(gates[:, Hp:2 * Hp])
        g_g = jnp.tanh(gates[:, 2 * Hp:3 * Hp])
        o_g = jax.nn.sigmoid(gates[:, 3 * Hp:4 * Hp])
        c_new = f_g * c_scr[...] + i_g * g_g
        h_new = o_g * jnp.tanh(c_new)
        c_scr[...] = c_new
        h_scr[...] = h_new
        hbuf[pl.ds(row0, b_block), :] = h_new.astype(compute_dtype)
        return carry

    lax.fori_loop(0, t_block, step, 0, unroll=True)

    if fuse_fc:
        # Fused linear head: one chunk-wide matmul, off the serial critical path.
        logits = (jnp.dot(hbuf[...], fcw_ref[...],
                          preferred_element_type=jnp.float32) + fcb_ref[...])
        o_ref[...] = logits.reshape(t_block, b_block, -1)
    else:
        # Single lane-dense store of the whole chunk (bf16 inter-layer activations).
        o_ref[...] = hbuf[...].reshape(t_block, b_block, -1).astype(o_ref.dtype)


# ----------------------------------------------------------------------------
# Wrapper (pallas_call plumbing)
# ----------------------------------------------------------------------------
def lstm_layer(x_tbe, wih_t, whh_t, bias, h0, c0, *, t_block, b_block,
               fc=None, compute_dtype=COMPUTE_DTYPE):
    """x_tbe: (Tp, Bp, Ep) time-major.  Returns (Tp, Bp, Hp) bf16 hidden states,
    or (Tp, Bp, Vp) f32 logits when `fc=(fc_w_t, fc_b)` is given (last layer)."""
    Tp, Bp, Ep = x_tbe.shape
    Hp4 = wih_t.shape[1]
    Hp = Hp4 // 4
    assert Tp % t_block == 0 and Bp % b_block == 0
    n_b, n_t = Bp // b_block, Tp // t_block

    fuse_fc = fc is not None
    if fuse_fc:
        fcw_t, fcb = fc
        out_cols, out_dtype = fcw_t.shape[1], jnp.float32
    else:
        out_cols, out_dtype = Hp, compute_dtype

    in_specs = [
        pl.BlockSpec((t_block, b_block, Ep), lambda b, t: (t, b, 0)),
        pl.BlockSpec((Ep, Hp4), lambda b, t: (0, 0)),
        pl.BlockSpec((Hp, Hp4), lambda b, t: (0, 0)),
        pl.BlockSpec((1, Hp4), lambda b, t: (0, 0)),
        pl.BlockSpec((1, Hp), lambda b, t: (0, 0)),
        pl.BlockSpec((1, Hp), lambda b, t: (0, 0)),
    ]
    args = [x_tbe, wih_t, whh_t, bias, h0, c0]
    if fuse_fc:
        in_specs += [pl.BlockSpec((Hp, out_cols), lambda b, t: (0, 0)),
                     pl.BlockSpec((1, out_cols), lambda b, t: (0, 0))]
        args += [fcw_t, fcb]

    # Explicit VMEM budget (double-buffered x / out chunks + weights + scratch),
    # 2x headroom, capped well under the v7x 64 MiB physical VMEM.
    xb = jnp.dtype(x_tbe.dtype).itemsize
    wb = jnp.dtype(compute_dtype).itemsize
    ob = jnp.dtype(out_dtype).itemsize
    est = (2 * t_block * b_block * Ep * xb                  # pipelined x blocks
           + 2 * t_block * b_block * out_cols * ob          # pipelined out blocks
           + (Ep + Hp) * Hp4 * wb + Hp4 * 4 + 2 * Hp * 4    # weights + bias + h0/c0
           + 2 * b_block * Hp * 4                           # h/c carry
           + t_block * b_block * (Hp4 * 4 + Hp * wb))       # gx + hbuf scratch
    if fuse_fc:
        est += Hp * out_cols * wb + out_cols * 4
    vmem_limit = int(min(max(2 * est, 16 * 2**20), 48 * 2**20))

    kernel = functools.partial(_lstm_layer_kernel, hidden=Hp, t_block=t_block,
                               b_block=b_block, compute_dtype=compute_dtype,
                               fuse_fc=fuse_fc)
    return pl.pallas_call(
        kernel,
        out_shape=jax.ShapeDtypeStruct((Tp, Bp, out_cols), out_dtype),
        grid=(n_b, n_t),
        in_specs=in_specs,
        out_specs=pl.BlockSpec((t_block, b_block, out_cols), lambda b, t: (t, b, 0)),
        scratch_shapes=[
            pltpu.VMEM((b_block, Hp), jnp.float32),             # h carry
            pltpu.VMEM((b_block, Hp), jnp.float32),             # c carry
            pltpu.VMEM((t_block * b_block, Hp4), jnp.float32),  # chunk input projection
            pltpu.VMEM((t_block * b_block, Hp), compute_dtype), # chunk hidden buffer
        ],
        compiler_params=pltpu.CompilerParams(
            dimension_semantics=("parallel", "arbitrary"),
            vmem_limit_bytes=vmem_limit),
    )(*args)


# ----------------------------------------------------------------------------
# Parameters: raw (PyTorch layout) init + one-time kernel-ready preparation
# ----------------------------------------------------------------------------
def init_params(key, num_features, embedding_dim, hidden_units, num_layers):
    k = 1.0 / jnp.sqrt(hidden_units)
    params = {}
    key, sub = jax.random.split(key)
    params["embedding"] = jax.random.normal(
        sub, (num_features, embedding_dim), jnp.float32)   # nn.Embedding default ~ N(0,1)
    layers = []
    for layer in range(num_layers):
        in_dim = embedding_dim if layer == 0 else hidden_units
        key, k1, k2, k3, k4 = jax.random.split(key, 5)
        layers.append({
            "w_ih": jax.random.uniform(k1, (4 * hidden_units, in_dim),
                                       jnp.float32, -k, k),
            "w_hh": jax.random.uniform(k2, (4 * hidden_units, hidden_units),
                                       jnp.float32, -k, k),
            "b_ih": jax.random.uniform(k3, (4 * hidden_units,), jnp.float32, -k, k),
            "b_hh": jax.random.uniform(k4, (4 * hidden_units,), jnp.float32, -k, k),
        })
    params["lstm"] = layers
    key, k1, k2 = jax.random.split(key, 3)
    params["fc_w"] = jax.random.uniform(k1, (num_features, hidden_units),
                                        jnp.float32, -k, k)
    params["fc_b"] = jax.random.uniform(k2, (num_features,), jnp.float32, -k, k)
    # learnable initial states (zeros, as in the PyTorch module __init__)
    params["h"] = jnp.zeros((num_layers, 1, hidden_units), jnp.float32)
    params["c"] = jnp.zeros((num_layers, 1, hidden_units), jnp.float32)
    return params


def _pad_gate_weight(w, H, Hp, in_dim, in_p, dtype):
    # w: (4H, in_dim), gate order [i,f,g,o]. Pad per gate block, pre-transpose.
    w = w.reshape(4, H, in_dim)
    w = jnp.pad(w, ((0, 0), (0, Hp - H), (0, in_p - in_dim)))
    return jnp.transpose(w.reshape(4 * Hp, in_p)).astype(dtype)   # (in_p, 4Hp)


def _pad_gate_bias(b, H, Hp):
    b = b.reshape(4, H)
    b = jnp.pad(b, ((0, 0), (0, Hp - H)))
    return b.reshape(1, 4 * Hp).astype(jnp.float32)


def prepare_params(raw, *, num_features, embedding_dim, hidden_units,
                   weight_dtype=COMPUTE_DTYPE):
    """Pad to (8,128)-friendly shapes, pre-transpose + pre-cast weights once."""
    H, E, V = hidden_units, embedding_dim, num_features
    Hp, Ep, Vp = _round_up(H, 128), _round_up(E, 128), _round_up(V, 128)
    prep = {"H": H, "E": E, "V": V, "Hp": Hp, "Ep": Ep, "Vp": Vp}
    prep["embedding"] = jnp.pad(raw["embedding"], ((0, 0), (0, Ep - E)))
    layers = []
    for li, p in enumerate(raw["lstm"]):
        in_dim, in_p = (E, Ep) if li == 0 else (H, Hp)
        layers.append({
            "wih_t": _pad_gate_weight(p["w_ih"], H, Hp, in_dim, in_p, weight_dtype),
            "whh_t": _pad_gate_weight(p["w_hh"], H, Hp, H, Hp, weight_dtype),
            "bias": _pad_gate_bias(p["b_ih"] + p["b_hh"], H, Hp),
        })
    prep["lstm"] = layers
    prep["fc_w_t"] = jnp.transpose(
        jnp.pad(raw["fc_w"], ((0, Vp - V), (0, Hp - H)))).astype(weight_dtype)
    prep["fc_b"] = jnp.pad(raw["fc_b"], (0, Vp - V)).reshape(1, Vp).astype(jnp.float32)
    prep["h0"] = jnp.pad(raw["h"][:, 0, :], ((0, 0), (0, Hp - H)))   # (L, Hp)
    prep["c0"] = jnp.pad(raw["c"][:, 0, :], ((0, 0), (0, Hp - H)))
    return prep


# ----------------------------------------------------------------------------
# Forward pass
# ----------------------------------------------------------------------------
def lstm_forward(prep, tokens, *, t_block=8, b_block=8):
    """tokens: (B, T) int32  ->  logits: (B, T, num_features) float32."""
    B, T = tokens.shape
    V = prep["V"]
    Bp = _round_up(B, b_block)
    Tp = _round_up(T, t_block)

    # Embedding gather (plain XLA glue); table is already E-padded.
    x = jnp.take(prep["embedding"], tokens, axis=0)        # (B, T, Ep)
    x = jnp.transpose(x, (1, 0, 2)).astype(COMPUTE_DTYPE)  # (T, B, Ep) time-major bf16
    x = jnp.pad(x, ((0, Tp - T), (0, Bp - B), (0, 0)))     # (Tp, Bp, Ep) aligned

    layers = prep["lstm"]
    for li in range(len(layers) - 1):
        layer = layers[li]
        x = lstm_layer(x, layer["wih_t"], layer["whh_t"], layer["bias"],
                       prep["h0"][li:li + 1], prep["c0"][li:li + 1],
                       t_block=t_block, b_block=b_block)   # bf16 (Tp, Bp, Hp)
        # TODO(synk): layer outputs round-trip through HBM between pallas_calls; a
        # fully fused multi-layer kernel (emit_pipeline / pl.ANY) would keep them
        # VMEM-resident.

    last = layers[-1]
    y = lstm_layer(x, last["wih_t"], last["whh_t"], last["bias"],
                   prep["h0"][-1:], prep["c0"][-1:],
                   fc=(prep["fc_w_t"], prep["fc_b"]),
                   t_block=t_block, b_block=b_block)       # f32 (Tp, Bp, Vp)
    y = y[:T, :B, :V]
    return jnp.transpose(y, (1, 0, 2))                     # (B, T, V) batch_first


# ----------------------------------------------------------------------------
# Pure-JAX references
# ----------------------------------------------------------------------------
def _f32_dot(a, b):
    return jnp.dot(a, b, preferred_element_type=jnp.float32)


def _bf16_dot(a, b):
    # Emulates the kernel's MXU path: bf16 operands, f32 accumulation.
    return jnp.dot(a.astype(jnp.bfloat16), b.astype(jnp.bfloat16),
                   preferred_element_type=jnp.float32)


def lstm_forward_ref(params, tokens, dot_fn=_f32_dot):
    B, T = tokens.shape
    H = params["h"].shape[-1]
    x = jnp.transpose(params["embedding"][tokens], (1, 0, 2))  # (T, B, E)
    for layer, p in enumerate(params["lstm"]):
        h = jnp.broadcast_to(params["h"][layer, 0], (B, H))
        c = jnp.broadcast_to(params["c"][layer, 0], (B, H))
        outs = []
        for t in range(T):
            g = (dot_fn(x[t], p["w_ih"].T) + dot_fn(h, p["w_hh"].T)
                 + p["b_ih"] + p["b_hh"])
            i = jax.nn.sigmoid(g[:, 0:H])
            f = jax.nn.sigmoid(g[:, H:2 * H])
            gg = jnp.tanh(g[:, 2 * H:3 * H])
            o = jax.nn.sigmoid(g[:, 3 * H:4 * H])
            c = f * c + i * gg
            h = o * jnp.tanh(c)
            outs.append(h)
        x = jnp.stack(outs, axis=0)
    y = dot_fn(x.reshape(T * B, H), params["fc_w"].T) + params["fc_b"]
    return jnp.transpose(y.reshape(T, B, -1), (1, 0, 2))


# ----------------------------------------------------------------------------
if __name__ == "__main__":
    num_features = 16      # vocab size
    embedding_dim = 32
    hidden_units = 32
    num_layers = 2
    batch, seq = 2, 8

    key = jax.random.PRNGKey(0)
    key, pkey, tkey = jax.random.split(key, 3)
    raw = init_params(pkey, num_features, embedding_dim, hidden_units, num_layers)
    tokens = jax.random.randint(tkey, (batch, seq), 0, num_features, jnp.int32)

    prep = prepare_params(raw, num_features=num_features,
                          embedding_dim=embedding_dim, hidden_units=hidden_units)

    # t_block=4 -> 2 time blocks: exercises the h/c scratch carry across grid steps.
    out = jax.block_until_ready(lstm_forward(prep, tokens, t_block=4, b_block=8))
    assert out.shape == (batch, seq, num_features)

    # Strict check vs a reference emulating the kernel's bf16-MXU numerics.
    ref_bf16 = jax.block_until_ready(lstm_forward_ref(raw, tokens, dot_fn=_bf16_dot))
    err_bf16 = float(jnp.max(jnp.abs(out - ref_bf16)))
    assert jnp.allclose(out, ref_bf16, atol=2e-3, rtol=2e-3), \
        f"mismatch vs bf16-MXU reference (max abs err {err_bf16})"

    # Loose sanity check vs the pure-f32 PyTorch-semantics reference.
    ref_f32 = jax.block_until_ready(lstm_forward_ref(raw, tokens, dot_fn=_f32_dot))
    err_f32 = float(jnp.max(jnp.abs(out - ref_f32)))
    assert jnp.allclose(out, ref_f32, atol=1e-1, rtol=1e-1), \
        f"mismatch vs f32 reference (max abs err {err_f32})"

    print("KERNEL_OK")
</pallas_src>

<mosaic_0001>
module attributes {stable_mosaic.version = 11 : i64} {
  func.func @_lstm_layer_kernel(%arg0: i32, %arg1: i32, %arg2: memref<4x8x128xbf16, #tpu.memory_space<vmem>>, %arg3: memref<128x512xbf16, #tpu.memory_space<vmem>>, %arg4: memref<128x512xbf16, #tpu.memory_space<vmem>>, %arg5: memref<1x512xf32, #tpu.memory_space<vmem>>, %arg6: memref<1x128xf32, #tpu.memory_space<vmem>>, %arg7: memref<1x128xf32, #tpu.memory_space<vmem>>, %arg8: memref<4x8x128xbf16, #tpu.memory_space<vmem>>, %arg9: memref<8x128xf32, #tpu.memory_space<vmem>>, %arg10: memref<8x128xf32, #tpu.memory_space<vmem>>, %arg11: memref<32x512xf32, #tpu.memory_space<vmem>>, %arg12: memref<32x128xbf16, #tpu.memory_space<vmem>>) attributes {dimension_semantics = [#tpu.dimension_semantics<parallel>, #tpu.dimension_semantics<arbitrary>], iteration_bounds = array<i64: 1, 2>, scalar_prefetch = 0 : i64, scratch_operands = 4 : i64, tpu.core_type = #tpu.core_type<tc>, window_params = [{transform_indices = @transform_0, window_bounds = array<i64: 4, 8, 128>}, {pipeline_mode = #tpu.pipeline_mode<synchronous>, transform_indices = @transform_1, window_bounds = array<i64: 128, 512>}, {pipeline_mode = #tpu.pipeline_mode<synchronous>, transform_indices = @transform_2, window_bounds = array<i64: 128, 512>}, {pipeline_mode = #tpu.pipeline_mode<synchronous>, transform_indices = @transform_3, window_bounds = array<i64: 1, 512>}, {pipeline_mode = #tpu.pipeline_mode<synchronous>, transform_indices = @transform_4, window_bounds = array<i64: 1, 128>}, {pipeline_mode = #tpu.pipeline_mode<synchronous>, transform_indices = @transform_5, window_bounds = array<i64: 1, 128>}, {transform_indices = @transform_6, window_bounds = array<i64: 4, 8, 128>}]} {
    %c0_i32 = arith.constant 0 : i32
    %0 = arith.cmpi eq, %arg1, %c0_i32 : i32
    %1 = arith.extui %0 : i1 to i32
    %c0_i32_0 = arith.constant 0 : i32
    %2 = arith.cmpi ne, %1, %c0_i32_0 : i32
    scf.if %2 {
      %c0_82 = arith.constant 0 : index
      %c0_83 = arith.constant 0 : index
      %174 = vector.load %arg6[%c0_82, %c0_83] : memref<1x128xf32, #tpu.memory_space<vmem>>, vector<1x128xf32>
      %175 = vector.shape_cast %174 : vector<1x128xf32> to vector<1x128xf32>
      %176 = vector.broadcast %175 : vector<1x128xf32> to vector<8x128xf32>
      %c0_84 = arith.constant 0 : index
      %c0_85 = arith.constant 0 : index
      %177 = vector.load %arg9[%c0_84, %c0_85] : memref<8x128xf32, #tpu.memory_space<vmem>>, vector<8x128xf32>
      tpu.vector_store %arg9[%c0_84, %c0_85], %176 {strides = array<i32>} : memref<8x128xf32, #tpu.memory_space<vmem>>, vector<8x128xf32>,
      %c0_86 = arith.constant 0 : index
      %c0_87 = arith.constant 0 : index
      %178 = vector.load %arg7[%c0_86, %c0_87] : memref<1x128xf32, #tpu.memory_space<vmem>>, vector<1x128xf32>
      %179 = vector.shape_cast %178 : vector<1x128xf32> to vector<1x128xf32>
      %180 = vector.broadcast %179 : vector<1x128xf32> to vector<8x128xf32>
      %c0_88 = arith.constant 0 : index
      %c0_89 = arith.constant 0 : index
      %181 = vector.load %arg10[%c0_88, %c0_89] : memref<8x128xf32, #tpu.memory_space<vmem>>, vector<8x128xf32>
      tpu.vector_store %arg10[%c0_88, %c0_89], %180 {strides = array<i32>} : memref<8x128xf32, #tpu.memory_space<vmem>>, vector<8x128xf32>,
    } else {
    }
    %c0 = arith.constant 0 : index
    %c0_1 = arith.constant 0 : index
    %c0_2 = arith.constant 0 : index
    %3 = vector.load %arg2[%c0, %c0_1, %c0_2] : memref<4x8x128xbf16, #tpu.memory_space<vmem>>, vector<4x8x128xbf16>
    %4 = vector.shape_cast %3 : vector<4x8x128xbf16> to vector<32x128xbf16>
    %c0_3 = arith.constant 0 : index
    %c0_4 = arith.constant 0 : index
    %5 = vector.load %arg3[%c0_3, %c0_4] : memref<128x512xbf16, #tpu.memory_space<vmem>>, vector<128x512xbf16>
    %cst = arith.constant dense<0.000000e+00> : vector<32x512xf32>
    %6 = tpu.matmul %4, %5, %cst {dimension_numbers = #tpu.dot_dimension_numbers<[1], [0], [0], [1], [0, 0, 1, 1], [], []>} : vector<32x128xbf16>, vector<128x512xbf16>, vector<32x512xf32> -> vector<32x512xf32>
    %c0_5 = arith.constant 0 : index
    %c0_6 = arith.constant 0 : index
    %7 = vector.load %arg5[%c0_5, %c0_6] : memref<1x512xf32, #tpu.memory_space<vmem>>, vector<1x512xf32>
    %8 = vector.broadcast %7 : vector<1x512xf32> to vector<32x512xf32>
    %9 = arith.addf %6, %8 : vector<32x512xf32>
    %c0_7 = arith.constant 0 : index
    %c0_8 = arith.constant 0 : index
    %10 = vector.load %arg11[%c0_7, %c0_8] : memref<32x512xf32, #tpu.memory_space<vmem>>, vector<32x512xf32>
    tpu.vector_store %arg11[%c0_7, %c0_8], %9 {strides = array<i32>} : memref<32x512xf32, #tpu.memory_space<vmem>>, vector<32x512xf32>,
    %c0_i32_9 = arith.constant 0 : i32
    %c8_i32 = arith.constant 8 : i32
    %11 = arith.muli %c0_i32_9, %c8_i32 : i32
    %12 = tpu.assume_multiple %11, 8 : i32
    %c0_10 = arith.constant 0 : index
    %c0_11 = arith.constant 0 : index
    %13 = vector.load %arg9[%c0_10, %c0_11] : memref<8x128xf32, #tpu.memory_space<vmem>>, vector<8x128xf32>
    %14 = arith.truncf %13 : vector<8x128xf32> to vector<8x128xbf16>
    %c0_12 = arith.constant 0 : index
    %c0_13 = arith.constant 0 : index
    %15 = vector.load %arg4[%c0_12, %c0_13] : memref<128x512xbf16, #tpu.memory_space<vmem>>, vector<128x512xbf16>
    %cst_14 = arith.constant dense<0.000000e+00> : vector<8x512xf32>
    %16 = tpu.matmul %14, %15, %cst_14 {dimension_numbers = #tpu.dot_dimension_numbers<[1], [0], [0], [1], [0, 0, 1, 1], [], []>} : vector<8x128xbf16>, vector<128x512xbf16>, vector<8x512xf32> -> vector<8x512xf32>
    %17 = arith.index_cast %12 : i32 to index
    %c0_15 = arith.constant 0 : index
    %18 = vector.load %arg11[%17, %c0_15] : memref<32x512xf32, #tpu.memory_space<vmem>>, vector<8x512xf32>
    %19 = arith.addf %16, %18 : vector<8x512xf32>
    %20 = vector.extract_strided_slice %19 {offsets = [0, 0], sizes = [8, 128], strides = [1, 1]} : vector<8x512xf32> to vector<8x128xf32>
    %21 = arith.negf %20 : vector<8x128xf32>
    %22 = math.exp %21 : vector<8x128xf32>
    %cst_16 = arith.constant 1.000000e+00 : f32
    %23 = vector.broadcast %cst_16 : f32 to vector<8x128xf32>
    %24 = arith.addf %23, %22 : vector<8x128xf32>
    %25 = arith.divf %23, %24 : vector<8x128xf32>
    %26 = vector.extract_strided_slice %19 {offsets = [0, 128], sizes = [8, 128], strides = [1, 1]} : vector<8x512xf32> to vector<8x128xf32>
    %27 = arith.negf %26 : vector<8x128xf32>
    %28 = math.exp %27 : vector<8x128xf32>
    %cst_17 = arith.constant 1.000000e+00 : f32
    %29 = vector.broadcast %cst_17 : f32 to vector<8x128xf32>
    %30 = arith.addf %29, %28 : vector<8x128xf32>
    %31 = arith.divf %29, %30 : vector<8x128xf32>
    %32 = vector.extract_strided_slice %19 {offsets = [0, 256], sizes = [8, 128], strides = [1, 1]} : vector<8x512xf32> to vector<8x128xf32>
    %33 = math.tanh %32 : vector<8x128xf32>
    %34 = vector.extract_strided_slice %19 {offsets = [0, 384], sizes = [8, 128], strides = [1, 1]} : vector<8x512xf32> to vector<8x128xf32>
    %35 = arith.negf %34 : vector<8x128xf32>
    %36 = math.exp %35 : vector<8x128xf32>
    %cst_18 = arith.constant 1.000000e+00 : f32
    %37 = vector.broadcast %cst_18 : f32 to vector<8x128xf32>
    %38 = arith.addf %37, %36 : vector<8x128xf32>
    %39 = arith.divf %37, %38 : vector<8x128xf32>
    %c0_19 = arith.constant 0 : index
    %c0_20 = arith.constant 0 : index
    %40 = vector.load %arg10[%c0_19, %c0_20] : memref<8x128xf32, #tpu.memory_space<vmem>>, vector<8x128xf32>
    %41 = arith.mulf %31, %40 : vector<8x128xf32>
    %42 = arith.mulf %25, %33 : vector<8x128xf32>
    %43 = arith.addf %41, %42 : vector<8x128xf32>
    %44 = math.tanh %43 : vector<8x128xf32>
    %45 = arith.mulf %39, %44 : vector<8x128xf32>
    %c0_21 = arith.constant 0 : index
    %c0_22 = arith.constant 0 : index
    %46 = vector.load %arg10[%c0_21, %c0_22] : memref<8x128xf32, #tpu.memory_space<vmem>>, vector<8x128xf32>
    tpu.vector_store %arg10[%c0_21, %c0_22], %43 {strides = array<i32>} : memref<8x128xf32, #tpu.memory_space<vmem>>, vector<8x128xf32>,
    %c0_23 = arith.constant 0 : index
    %c0_24 = arith.constant 0 : index
    %47 = vector.load %arg9[%c0_23, %c0_24] : memref<8x128xf32, #tpu.memory_space<vmem>>, vector<8x128xf32>
    tpu.vector_store %arg9[%c0_23, %c0_24], %45 {strides = array<i32>} : memref<8x128xf32, #tpu.memory_space<vmem>>, vector<8x128xf32>,
    %48 = arith.truncf %45 : vector<8x128xf32> to vector<8x128xbf16>
    %49 = arith.index_cast %12 : i32 to index
    %c0_25 = arith.constant 0 : index
    %50 = vector.load %arg12[%49, %c0_25] : memref<32x128xbf16, #tpu.memory_space<vmem>>, vector<8x128xbf16>
    tpu.vector_store %arg12[%49, %c0_25], %48 {strides = array<i32>} : memref<32x128xbf16, #tpu.memory_space<vmem>>, vector<8x128xbf16>,
    %c1_i32 = arith.constant 1 : i32
    %c8_i32_26 = arith.constant 8 : i32
    %51 = arith.muli %c1_i32, %c8_i32_26 : i32
    %52 = tpu.assume_multiple %51, 8 : i32
    %c0_27 = arith.constant 0 : index
    %c0_28 = arith.constant 0 : index
    %53 = vector.load %arg9[%c0_27, %c0_28] : memref<8x128xf32, #tpu.memory_space<vmem>>, vector<8x128xf32>
    %54 = arith.truncf %53 : vector<8x128xf32> to vector<8x128xbf16>
    %c0_29 = arith.constant 0 : index
    %c0_30 = arith.constant 0 : index
    %55 = vector.load %arg4[%c0_29, %c0_30] : memref<128x512xbf16, #tpu.memory_space<vmem>>, vector<128x512xbf16>
    %cst_31 = arith.constant dense<0.000000e+00> : vector<8x512xf32>
    %56 = tpu.matmul %54, %55, %cst_31 {dimension_numbers = #tpu.dot_dimension_numbers<[1], [0], [0], [1], [0, 0, 1, 1], [], []>} : vector<8x128xbf16>, vector<128x512xbf16>, vector<8x512xf32> -> vector<8x512xf32>
    %57 = arith.index_cast %52 : i32 to index
    %c0_32 = arith.constant 0 : index
    %58 = vector.load %arg11[%57, %c0_32] : memref<32x512xf32, #tpu.memory_space<vmem>>, vector<8x512xf32>
    %59 = arith.addf %56, %58 : vector<8x512xf32>
    %60 = vector.extract_strided_slice %59 {offsets = [0, 0], sizes = [8, 128], strides = [1, 1]} : vector<8x512xf32> to vector<8x128xf32>
    %61 = arith.negf %60 : vector<8x128xf32>
    %62 = math.exp %61 : vector<8x128xf32>
    %cst_33 = arith.constant 1.000000e+00 : f32
    %63 = vector.broadcast %cst_33 : f32 to vector<8x128xf32>
    %64 = arith.addf %63, %62 : vector<8x128xf32>
    %65 = arith.divf %63, %64 : vector<8x128xf32>
    %66 = vector.extract_strided_slice %59 {offsets = [0, 128], sizes = [8, 128], strides = [1, 1]} : vector<8x512xf32> to vector<8x128xf32>
    %67 = arith.negf %66 : vector<8x128xf32>
    %68 = math.exp %67 : vector<8x128xf32>
    %cst_34 = arith.constant 1.000000e+00 : f32
    %69 = vector.broadcast %cst_34 : f32 to vector<8x128xf32>
    %70 = arith.addf %69, %68 : vector<8x128xf32>
    %71 = arith.divf %69, %70 : vector<8x128xf32>
    %72 = vector.extract_strided_slice %59 {offsets = [0, 256], sizes = [8, 128], strides = [1, 1]} : vector<8x512xf32> to vector<8x128xf32>
    %73 = math.tanh %72 : vector<8x128xf32>
    %74 = vector.extract_strided_slice %59 {offsets = [0, 384], sizes = [8, 128], strides = [1, 1]} : vector<8x512xf32> to vector<8x128xf32>
    %75 = arith.negf %74 : vector<8x128xf32>
    %76 = math.exp %75 : vector<8x128xf32>
    %cst_35 = arith.constant 1.000000e+00 : f32
    %77 = vector.broadcast %cst_35 : f32 to vector<8x128xf32>
    %78 = arith.addf %77, %76 : vector<8x128xf32>
    %79 = arith.divf %77, %78 : vector<8x128xf32>
    %c0_36 = arith.constant 0 : index
    %c0_37 = arith.constant 0 : index
    %80 = vector.load %arg10[%c0_36, %c0_37] : memref<8x128xf32, #tpu.memory_space<vmem>>, vector<8x128xf32>
    %81 = arith.mulf %71, %80 : vector<8x128xf32>
    %82 = arith.mulf %65, %73 : vector<8x128xf32>
    %83 = arith.addf %81, %82 : vector<8x128xf32>
    %84 = math.tanh %83 : vector<8x128xf32>
    %85 = arith.mulf %79, %84 : vector<8x128xf32>
    %c0_38 = arith.constant 0 : index
    %c0_39 = arith.constant 0 : index
    %86 = vector.load %arg10[%c0_38, %c0_39] : memref<8x128xf32, #tpu.memory_space<vmem>>, vector<8x128xf32>
    tpu.vector_store %arg10[%c0_38, %c0_39], %83 {strides = array<i32>} : memref<8x128xf32, #tpu.memory_space<vmem>>, vector<8x128xf32>,
    %c0_40 = arith.constant 0 : index
    %c0_41 = arith.constant 0 : index
    %87 = vector.load %arg9[%c0_40, %c0_41] : memref<8x128xf32, #tpu.memory_space<vmem>>, vector<8x128xf32>
    tpu.vector_store %arg9[%c0_40, %c0_41], %85 {strides = array<i32>} : memref<8x128xf32, #tpu.memory_space<vmem>>, vector<8x128xf32>,
    %88 = arith.truncf %85 : vector<8x128xf32> to vector<8x128xbf16>
    %89 = arith.index_cast %52 : i32 to index
    %c0_42 = arith.constant 0 : index
    %90 = vector.load %arg12[%89, %c0_42] : memref<32x128xbf16, #tpu.memory_space<vmem>>, vector<8x128xbf16>
    tpu.vector_store %arg12[%89, %c0_42], %88 {strides = array<i32>} : memref<32x128xbf16, #tpu.memory_space<vmem>>, vector<8x128xbf16>,
    %c2_i32 = arith.constant 2 : i32
    %c8_i32_43 = arith.constant 8 : i32
    %91 = arith.muli %c2_i32, %c8_i32_43 : i32
    %92 = tpu.assume_multiple %91, 8 : i32
    %c0_44 = arith.constant 0 : index
    %c0_45 = arith.constant 0 : index
    %93 = vector.load %arg9[%c0_44, %c0_45] : memref<8x128xf32, #tpu.memory_space<vmem>>, vector<8x128xf32>
    %94 = arith.truncf %93 : vector<8x128xf32> to vector<8x128xbf16>
    %c0_46 = arith.constant 0 : index
    %c0_47 = arith.constant 0 : index
    %95 = vector.load %arg4[%c0_46, %c0_47] : memref<128x512xbf16, #tpu.memory_space<vmem>>, vector<128x512xbf16>
    %cst_48 = arith.constant dense<0.000000e+00> : vector<8x512xf32>
    %96 = tpu.matmul %94, %95, %cst_48 {dimension_numbers = #tpu.dot_dimension_numbers<[1], [0], [0], [1], [0, 0, 1, 1], [], []>} : vector<8x128xbf16>, vector<128x512xbf16>, vector<8x512xf32> -> vector<8x512xf32>
    %97 = arith.index_cast %92 : i32 to index
    %c0_49 = arith.constant 0 : index
    %98 = vector.load %arg11[%97, %c0_49] : memref<32x512xf32, #tpu.memory_space<vmem>>, vector<8x512xf32>
    %99 = arith.addf %96, %98 : vector<8x512xf32>
    %100 = vector.extract_strided_slice %99 {offsets = [0, 0], sizes = [8, 128], strides = [1, 1]} : vector<8x512xf32> to vector<8x128xf32>
    %101 = arith.negf %100 : vector<8x128xf32>
    %102 = math.exp %101 : vector<8x128xf32>
    %cst_50 = arith.constant 1.000000e+00 : f32
    %103 = vector.broadcast %cst_50 : f32 to vector<8x128xf32>
    %104 = arith.addf %103, %102 : vector<8x128xf32>
    %105 = arith.divf %103, %104 : vector<8x128xf32>
    %106 = vector.extract_strided_slice %99 {offsets = [0, 128], sizes = [8, 128], strides = [1, 1]} : vector<8x512xf32> to vector<8x128xf32>
    %107 = arith.negf %106 : vector<8x128xf32>
    %108 = math.exp %107 : vector<8x128xf32>
    %cst_51 = arith.constant 1.000000e+00 : f32
    %109 = vector.broadcast %cst_51 : f32 to vector<8x128xf32>
    %110 = arith.addf %109, %108 : vector<8x128xf32>
    %111 = arith.divf %109, %110 : vector<8x128xf32>
    %112 = vector.extract_strided_slice %99 {offsets = [0, 256], sizes = [8, 128], strides = [1, 1]} : vector<8x512xf32> to vector<8x128xf32>
    %113 = math.tanh %112 : vector<8x128xf32>
    %114 = vector.extract_strided_slice %99 {offsets = [0, 384], sizes = [8, 128], strides = [1, 1]} : vector<8x512xf32> to vector<8x128xf32>
    %115 = arith.negf %114 : vector<8x128xf32>
    %116 = math.exp %115 : vector<8x128xf32>
    %cst_52 = arith.constant 1.000000e+00 : f32
    %117 = vector.broadcast %cst_52 : f32 to vector<8x128xf32>
    %118 = arith.addf %117, %116 : vector<8x128xf32>
    %119 = arith.divf %117, %118 : vector<8x128xf32>
    %c0_53 = arith.constant 0 : index
    %c0_54 = arith.constant 0 : index
    %120 = vector.load %arg10[%c0_53, %c0_54] : memref<8x128xf32, #tpu.memory_space<vmem>>, vector<8x128xf32>
    %121 = arith.mulf %111, %120 : vector<8x128xf32>
    %122 = arith.mulf %105, %113 : vector<8x128xf32>
    %123 = arith.addf %121, %122 : vector<8x128xf32>
    %124 = math.tanh %123 : vector<8x128xf32>
    %125 = arith.mulf %119, %124 : vector<8x128xf32>
    %c0_55 = arith.constant 0 : index
    %c0_56 = arith.constant 0 : index
    %126 = vector.load %arg10[%c0_55, %c0_56] : memref<8x128xf32, #tpu.memory_space<vmem>>, vector<8x128xf32>
    tpu.vector_store %arg10[%c0_55, %c0_56], %123 {strides = array<i32>} : memref<8x128xf32, #tpu.memory_space<vmem>>, vector<8x128xf32>,
    %c0_57 = arith.constant 0 : index
    %c0_58 = arith.constant 0 : index
    %127 = vector.load %arg9[%c0_57, %c0_58] : memref<8x128xf32, #tpu.memory_space<vmem>>, vector<8x128xf32>
    tpu.vector_store %arg9[%c0_57, %c0_58], %125 {strides = array<i32>} : memref<8x128xf32, #tpu.memory_space<vmem>>, vector<8x128xf32>,
    %128 = arith.truncf %125 : vector<8x128xf32> to vector<8x128xbf16>
    %129 = arith.index_cast %92 : i32 to index
    %c0_59 = arith.constant 0 : index
    %130 = vector.load %arg12[%129, %c0_59] : memref<32x128xbf16, #tpu.memory_space<vmem>>, vector<8x128xbf16>
    tpu.vector_store %arg12[%129, %c0_59], %128 {strides = array<i32>} : memref<32x128xbf16, #tpu.memory_space<vmem>>, vector<8x128xbf16>,
    %c3_i32 = arith.constant 3 : i32
    %c8_i32_60 = arith.constant 8 : i32
    %131 = arith.muli %c3_i32, %c8_i32_60 : i32
    %132 = tpu.assume_multiple %131, 8 : i32
    %c0_61 = arith.constant 0 : index
    %c0_62 = arith.constant 0 : index
    %133 = vector.load %arg9[%c0_61, %c0_62] : memref<8x128xf32, #tpu.memory_space<vmem>>, vector<8x128xf32>
    %134 = arith.truncf %133 : vector<8x128xf32> to vector<8x128xbf16>
    %c0_63 = arith.constant 0 : index
    %c0_64 = arith.constant 0 : index
    %135 = vector.load %arg4[%c0_63, %c0_64] : memref<128x512xbf16, #tpu.memory_space<vmem>>, vector<128x512xbf16>
    %cst_65 = arith.constant dense<0.000000e+00> : vector<8x512xf32>
    %136 = tpu.matmul %134, %135, %cst_65 {dimension_numbers = #tpu.dot_dimension_numbers<[1], [0], [0], [1], [0, 0, 1, 1], [], []>} : vector<8x128xbf16>, vector<128x512xbf16>, vector<8x512xf32> -> vector<8x512xf32>
    %137 = arith.index_cast %132 : i32 to index
    %c0_66 = arith.constant 0 : index
    %138 = vector.load %arg11[%137, %c0_66] : memref<32x512xf32, #tpu.memory_space<vmem>>, vector<8x512xf32>
    %139 = arith.addf %136, %138 : vector<8x512xf32>
    %140 = vector.extract_strided_slice %139 {offsets = [0, 0], sizes = [8, 128], strides = [1, 1]} : vector<8x512xf32> to vector<8x128xf32>
    %141 = arith.negf %140 : vector<8x128xf32>
    %142 = math.exp %141 : vector<8x128xf32>
    %cst_67 = arith.constant 1.000000e+00 : f32
    %143 = vector.broadcast %cst_67 : f32 to vector<8x128xf32>
    %144 = arith.addf %143, %142 : vector<8x128xf32>
    %145 = arith.divf %143, %144 : vector<8x128xf32>
    %146 = vector.extract_strided_slice %139 {offsets = [0, 128], sizes = [8, 128], strides = [1, 1]} : vector<8x512xf32> to vector<8x128xf32>
    %147 = arith.negf %146 : vector<8x128xf32>
    %148 = math.exp %147 : vector<8x128xf32>
    %cst_68 = arith.constant 1.000000e+00 : f32
    %149 = vector.broadcast %cst_68 : f32 to vector<8x128xf32>
    %150 = arith.addf %149, %148 : vector<8x128xf32>
    %151 = arith.divf %149, %150 : vector<8x128xf32>
    %152 = vector.extract_strided_slice %139 {offsets = [0, 256], sizes = [8, 128], strides = [1, 1]} : vector<8x512xf32> to vector<8x128xf32>
    %153 = math.tanh %152 : vector<8x128xf32>
    %154 = vector.extract_strided_slice %139 {offsets = [0, 384], sizes = [8, 128], strides = [1, 1]} : vector<8x512xf32> to vector<8x128xf32>
    %155 = arith.negf %154 : vector<8x128xf32>
    %156 = math.exp %155 : vector<8x128xf32>
    %cst_69 = arith.constant 1.000000e+00 : f32
    %157 = vector.broadcast %cst_69 : f32 to vector<8x128xf32>
    %158 = arith.addf %157, %156 : vector<8x128xf32>
    %159 = arith.divf %157, %158 : vector<8x128xf32>
    %c0_70 = arith.constant 0 : index
    %c0_71 = arith.constant 0 : index
    %160 = vector.load %arg10[%c0_70, %c0_71] : memref<8x128xf32, #tpu.memory_space<vmem>>, vector<8x128xf32>
    %161 = arith.mulf %151, %160 : vector<8x128xf32>
    %162 = arith.mulf %145, %153 : vector<8x128xf32>
    %163 = arith.addf %161, %162 : vector<8x128xf32>
    %164 = math.tanh %163 : vector<8x128xf32>
    %165 = arith.mulf %159, %164 : vector<8x128xf32>
    %c0_72 = arith.constant 0 : index
    %c0_73 = arith.constant 0 : index
    %166 = vector.load %arg10[%c0_72, %c0_73] : memref<8x128xf32, #tpu.memory_space<vmem>>, vector<8x128xf32>
    tpu.vector_store %arg10[%c0_72, %c0_73], %163 {strides = array<i32>} : memref<8x128xf32, #tpu.memory_space<vmem>>, vector<8x128xf32>,
    %c0_74 = arith.constant 0 : index
    %c0_75 = arith.constant 0 : index
    %167 = vector.load %arg9[%c0_74, %c0_75] : memref<8x128xf32, #tpu.memory_space<vmem>>, vector<8x128xf32>
    tpu.vector_store %arg9[%c0_74, %c0_75], %165 {strides = array<i32>} : memref<8x128xf32, #tpu.memory_space<vmem>>, vector<8x128xf32>,
    %168 = arith.truncf %165 : vector<8x128xf32> to vector<8x128xbf16>
    %169 = arith.index_cast %132 : i32 to index
    %c0_76 = arith.constant 0 : index
    %170 = vector.load %arg12[%169, %c0_76] : memref<32x128xbf16, #tpu.memory_space<vmem>>, vector<8x128xbf16>
    tpu.vector_store %arg12[%169, %c0_76], %168 {strides = array<i32>} : memref<32x128xbf16, #tpu.memory_space<vmem>>, vector<8x128xbf16>,
    %c4_i32 = arith.constant 4 : i32
    %c0_77 = arith.constant 0 : index
    %c0_78 = arith.constant 0 : index
    %171 = vector.load %arg12[%c0_77, %c0_78] : memref<32x128xbf16, #tpu.memory_space<vmem>>, vector<32x128xbf16>
    %172 = vector.shape_cast %171 : vector<32x128xbf16> to vector<4x8x128xbf16>
    %c0_79 = arith.constant 0 : index
    %c0_80 = arith.constant 0 : index
    %c0_81 = arith.constant 0 : index
    %173 = vector.load %arg8[%c0_79, %c0_80, %c0_81] : memref<4x8x128xbf16, #tpu.memory_space<vmem>>, vector<4x8x128xbf16>
    tpu.vector_store %arg8[%c0_79, %c0_80, %c0_81], %172 {strides = array<i32>} : memref<4x8x128xbf16, #tpu.memory_space<vmem>>, vector<4x8x128xbf16>,
    return
  }
  func.func @transform_0(%arg0: i32, %arg1: i32) -> (i32, i32, i32) {
    %c0_i32 = arith.constant 0 : i32
    %c0_i32_0 = arith.constant 0 : i32
    return %arg1, %arg0, %c0_i32 : i32, i32, i32
  }
  func.func @transform_1(%arg0: i32, %arg1: i32) -> (i32, i32) {
    %c0_i32 = arith.constant 0 : i32
    %c0_i32_0 = arith.constant 0 : i32
    %c0_i32_1 = arith.constant 0 : i32
    return %c0_i32, %c0_i32_0 : i32, i32
  }
  func.func @transform_2(%arg0: i32, %arg1: i32) -> (i32, i32) {
    %c0_i32 = arith.constant 0 : i32
    %c0_i32_0 = arith.constant 0 : i32
    %c0_i32_1 = arith.constant 0 : i32
    return %c0_i32, %c0_i32_0 : i32, i32
  }
  func.func @transform_3(%arg0: i32, %arg1: i32) -> (i32, i32) {
    %c0_i32 = arith.constant 0 : i32
    %c0_i32_0 = arith.constant 0 : i32
    %c0_i32_1 = arith.constant 0 : i32
    return %c0_i32, %c0_i32_0 : i32, i32
  }
  func.func @transform_4(%arg0: i32, %arg1: i32) -> (i32, i32) {
    %c0_i32 = arith.constant 0 : i32
    %c0_i32_0 = arith.constant 0 : i32
    %c0_i32_1 = arith.constant 0 : i32
    return %c0_i32, %c0_i32_0 : i32, i32
  }
  func.func @transform_5(%arg0: i32, %arg1: i32) -> (i32, i32) {
    %c0_i32 = arith.constant 0 : i32
    %c0_i32_0 = arith.constant 0 : i32
    %c0_i32_1 = arith.constant 0 : i32
    return %c0_i32, %c0_i32_0 : i32, i32
  }
  func.func @transform_6(%arg0: i32, %arg1: i32) -> (i32, i32, i32) {
    %c0_i32 = arith.constant 0 : i32
    %c0_i32_0 = arith.constant 0 : i32
    return %arg1, %arg0, %c0_i32 : i32, i32, i32
  }
}

</mosaic_0001>

<bundles_post_ra>
// kernel: tpu_custom_call.1
= control target key start
LH: loop header
LB: loop body
LE: loop exit
PB: predicated region body
PF: predicated region fallthrough
CT: control target
= control target key end

     0   :  { %s3189_s0 = inlined_call_operand.hbm [shape: bf16[8,8,128], index: 0, kind: input, shape index: {}]   ;;  %s3190_s1 = inlined_call_operand.hbm [shape: bf16[128,512], index: 1, kind: input, shape index: {}]   ;;  %s3191_s2 = inlined_call_operand.hbm [shape: bf16[128,512], index: 2, kind: input, shape index: {}]   ;;  %s3192_s3 = inlined_call_operand.vmem [shape: f32[1,512], index: 3, kind: input, shape index: {}]   ;;  %s3193_s4 = inlined_call_operand.vmem [shape: f32[1,128], index: 4, kind: input, shape index: {}]   ;;  %s3194_s5 = inlined_call_operand.vmem [shape: f32[1,128], index: 5, kind: input, shape index: {}]   ;;  %s3195_s6 = inlined_call_operand.hbm [shape: bf16[8,8,128], index: 6, kind: output, shape index: {}]  }
   0x1   :  { %3201 = sst [smem:[#allocation23_spill]] %s3190_s1 }
   0x2   :  { %3202 = sst [smem:[#allocation24_spill]] %s3191_s2 }
   0x3   :  { %11 = vsyncpa [#allocation7], 0 }
   0x4   :  { %13 = vsyncpa [#allocation7 + $0x1], 0 }
   0x5   :  { %14 = vsyncpa [#allocation10], 0 }
   0x6   :  { %15 = vsyncpa [#allocation8], 0 }
   0x7   :  { %17 = vsyncpa [#allocation8 + $0x1], 0  ;;  %s2734_s21 = smov 0   ;;  %s2736_s22 = smov 0  }
   0x8   :  { %s2738_s23 = smov 0   ;;  %s2740_s24 = smov 0  }
   0x9   :  { %s2742_s25 = smov 0   ;;  %s2744_s26 = smov 0  }
   0xa LB: > { %s2072_s27 = sadd.s32 4294967295, %s2686_s26   ;;  %s2073_s28 = sadd.s32 4294967294, %s2686_s26   ;;  %s2686_s26 = sphi %s2744_s26, %s23_s26   ;;  %s2682_s25 = sphi %s2742_s25, %s3236_s25   ;;  %s2678_s24 = sphi %s2740_s24, %s3235_s24   ;;  %s2674_s23 = sphi %s2738_s23, %s3234_s23   ;;  %s2670_s22 = sphi %s2736_s22, %s3233_s22   ;;  %s2666_s21 = sphi %s2734_s21, %s3232_s21  }
   0xb   : > { %p57_p0 = scmp.ne.s32.totalorder %s2670_s22, %s2666_s21  ;;  %p2768_p1 = scmp.eq.s32.totalorder %s2072_s27, 0 }
   0xc   : > { %p2772_p2 = scmp.eq.s32.totalorder %s2072_s27, 1  ;;  %p194_p3 = scmp.eq.s32.totalorder %s2073_s28, 1 }
   0xd   : > { %s3203_s29 = scalar_select %p2768_p1, 1, 0 }
   0xe   : > { %p2778_p4 = por %p2768_p1, %p57_p0  ;;  %p2074_p5 = scmp.ge.s32.totalorder %s2686_s26, 1 }
   0xf   : > { %p2783_p6 = por %p194_p3, %p57_p0  ;;  %p201_p7 = scmp.lt.s32.totalorder %s2686_s26, 3 }
  0x10   : > { %s3205_s7 = scalar_select %p2778_p4, 1, 0 }
  0x11   : > { %s3206_s8 = scalar_select %p2783_p6, 1, 0 }
  0x12   : > { %p2788_p8 = pnand %p2074_p5, %p201_p7  ;;  %s2688_s10 = smov [#allocation9]  }
  0x13   : > { %s213_s11 = sshll.u32 %s2688_s10, 4  ;;  %s2689_s13 = smov [#allocation11]   ;;  %s214_s11 = int_to_ptr.vmem [resolvable:$true] %s213_s11 }
  0x14   : > { %p2282_p9 = pneg %p2788_p8  ;;  %s226_s14 = sshll.u32 %s2689_s13, 4  ;;  %s227_s14 = int_to_ptr.vmem [resolvable:$true] %s226_s14 }
  0x15   : > { %s2533_s15 = scalar_lea.vmem %s214_s11, 4096  ;;  %p2541_p5 = scmp.lt.s32.totalorder %s214_s11, %s214_s11 }
  0x16   : > { %p2797_p11 = pnand %p2282_p9, %p2768_p1  ;;  %p2534_p13 = scmp.ne.s32.totalorder %s214_s11, %s2533_s15 }
  0x17   : > { %p2542_p7 = scmp.lt.s32.totalorder %s2533_s15, %s2533_s15 }
  0x18   : > { %p2524_p12 = pneg %p2797_p11 }
  0x19   : > { %p2543_p10 = por %p2542_p7, %p2541_p5 }
  0x1a   : > { %p2536_p0 = pnand %p2534_p13, %p2524_p12 }
  0x1c   : > { %p2537_p3 = pneg %p2536_p0 }
  0x1e   : > { %p2544_p9 = pnand %p2543_p10, %p2537_p3 }
  0x20   : > { %2547 = shalt.err (!%p2544_p9)
}
  0x21   : > { %s2690_s16 = smov 256   ;;  %s2691_s17 = smov 16  }
  0x22   : > { %s3209_s1 = sld [smem:[#allocation23_spill]]  ;;  %s2559_s20 = scalar_lea.vmem %s227_s14, 4096 }
  0x23   : > { %p2560_p6 = scmp.ne.s32.totalorder %s227_s14, %s2559_s20  ;;  %p2567_p1 = scmp.lt.s32.totalorder %s227_s14, %s227_s14 }
  0x24   : > { %p2568_p4 = scmp.lt.s32.totalorder %s2559_s20, %s2559_s20 }
  0x25   : > { %p2562_p13 = pnand %p2560_p6, %p2524_p12 }
  0x26   : > { %p2569_p5 = por %p2568_p4, %p2567_p1 }
  0x27   : > { %p2563_p0 = pneg %p2562_p13 }
  0x28   : > { %2285 = dma.hbm_to_vmem [thread:$0]  (!%p2797_p11), %s3209_s1, 4096, %s214_s11, [#allocation10], %s2690_s16, %s2690_s16, %s2691_s17  }
  0x29   : > { %p2570_p10 = pnand %p2569_p5, %p2563_p0 }
  0x2b   : > { %2573 = shalt.err (!%p2570_p10)
}
  0x2c   : > { %s3210_s2 = sld [smem:[#allocation24_spill]]  ;;  %s32_s10 = sadd.s32 1, %s2682_s25 }
  0x2d   : > { %s44_s11 = sadd.s32 1, %s2674_s23  ;;  %p33_p1 = scmp.ge.s32.totalorder %s32_s10, 2 }
  0x2e   : > { %p51_p4 = scmp.ne.s32.totalorder %s2674_s23, %s2670_s22  ;;  %p52_p6 = scmp.eq.s32.totalorder %s2686_s26, 0 }
  0x2f   : > { %p2299_p12 = scmp.lt.s32.totalorder %s2686_s26, 2  ;;  %s3238_s10 = smov (%p33_p1, %s32_s10), 0 }
  0x30   : > { %p53_p3 = por %p52_p6, %p51_p4  ;;  %p2829_p7 = por %p2772_p2, %p51_p4 }
  0x31   : > { %s39_s13 = ssub.s32 %s2682_s25, %s3238_s10  ;;  %s249_s15 = sand.u32 1, %s2674_s23  }
  0x32   : > { %2288 = dma.hbm_to_vmem [thread:$0]  (!%p2797_p11), %s3210_s2, 4096, %s227_s14, [#allocation10], %s2690_s16, %s2690_s16, %s2691_s17  }
  0x33   : > { %p42_p9 = scmp.eq.s32.totalorder %s39_s13, 0  ;;  %s2078_s14 = sshll.u32 %s249_s15, 4 }
  0x34   : > { %s2268_s16 = sshll.u32 %s2682_s25, 8  ;;  %s253_s27 = scalar_lea.vmem [#allocation6], %s2078_s14 }
  0x35   : > { %s2838_s17 = scalar_select %p42_p9, %s2674_s23, %s44_s11  }
  0x36   : > { %s260_s20 = scalar_lea.hbm %s3189_s0, %s2268_s16  ;;  %s261_s28 = sshll.u32 %s253_s27, 4  ;;  %s262_s28 = int_to_ptr.vmem [resolvable:$true] %s261_s28 }
  0x37   : > { %p2845_p11 = pnand %p2299_p12, %p53_p3  ;;  %s250_s1 = scalar_lea.sflag [#allocation7], %s249_s15 }
  0x38   : > { %s2587_s13 = scalar_lea.vmem %s262_s28, 256  ;;  %s2692_s11 = smov [#allocation6]  }
  0x39   : > { %p2576_p2 = pneg %p2845_p11  ;;  %p2588_p13 = scmp.ne.s32.totalorder %s262_s28, %s2587_s13 }
  0x3a   : > { %s2592_s2 = sshll.u32 %s2692_s11, 4  ;;  %s2593_s2 = int_to_ptr.vmem [resolvable:$false] %s2592_s2 }
  0x3b   : > { %p2590_p0 = pnand %p2588_p13, %p2576_p2  ;;  %s2594_s16 = scalar_lea.vmem %s2593_s2, 512 }
  0x3c   : > { %p2595_p10 = scmp.lt.s32.totalorder %s262_s28, %s2593_s2  ;;  %p2596_p1 = scmp.lt.s32.totalorder %s2594_s16, %s2587_s13 }
  0x3d   : > { %p2591_p5 = pneg %p2590_p0 }
  0x3e   : > { %p2597_p4 = por %p2596_p1, %p2595_p10 }
  0x40   : > { %p2598_p6 = pnand %p2597_p4, %p2591_p5 }
  0x42   : > { %2601 = shalt.err (!%p2598_p6)
}
  0x43   : > { %s2693_s14 = smov 64   ;;  %s2694_s18 = smov 4  }
  0x44   : > { %2292 = dma.hbm_to_vmem [thread:$0]  (!%p2845_p11), %s260_s20, 256, %s262_s28, %s250_s1, %s2693_s14, %s2693_s14, %s2694_s18  }
  0x45   : > { %273 = sbr.rel (%p2788_p8) target bundleno = 1183 (0x49f), region = 44 }
  0x4a   : > { %s2856_s15 = sand.u32 1, %s2670_s22   ;;  %p3213_p12 = scmp.ne.s32.totalorder %s3205_s7, 0 }
  0x4b   : > { %s2082_s19 = sshll.u32 %s2856_s15, 4  ;;  %s276_s2 = scalar_lea.sflag [#allocation7], %s2856_s15 }
  0x4c   : > { %s2860_s27 = scalar_lea.vmem [#allocation6], %s2082_s19 }
  0x4d   : > { %2653 = dma.done.wait (%p3213_p12), %s276_s2, 256  }
  0x4e   : > { %2655 = vsyncadd (%p3213_p12), %s276_s2, 4294967040  ;;  %p3214_p3 = scmp.ne.s32.totalorder %s3203_s29, 0 }
  0x50   : > { %2657 = dma.done.wait (%p3214_p3), [#allocation10], 8192  }
  0x51   : > { %2659 = vsyncadd (%p3214_p3), [#allocation10], 4294959104  ;;  %s2870_s1 = scalar_lea.vmem [#allocation12], %s2082_s19  ;;  %p2086_p8 = scmp.ne.s32.totalorder %s2678_s24, 0 }
  0x53   : > { %322 = sbr.rel (%p2086_p8) target bundleno = 91 (0x5b), region = 60 }
  0x58   : > { %v2087_v0 = vld [vmem:[%s3193_s4] ss:$0 sm:$0xff] }
  0x59   : > { %v2088_v1 = vld [vmem:[%s3194_s5] ss:$0 sm:$0xff]  ;;  %330 = vst [vmem:[#allocation2] sm:$0xff] %v2087_v0 }
  0x5a   : > { %338 = vst [vmem:[#allocation3] sm:$0xff] %v2088_v1 }
  0x5b PF: > { %v2360_v2 = vld [vmem:[#allocation9 + $0xe4] ss:$16 sps:$4 sm:$0xff]   ;;  %v2362_v3 = vld [vmem:[#allocation9 + $0xec] ss:$16 sps:$4 sm:$0xff]   ;;  %v3199_v4 = vmov 0   ;;  %s2269_s13 = sshll.u32 %s2678_s24, 8 }
  0x5c   : > { %601 = vmatprep.mubr.bf16.mxu0 %v3199_v4  ;;  %654 = vmatprep.mubr.bf16.mxu1 %v3199_v4  ;;  %v2364_v5 = vld [vmem:[#allocation9 + $0xe0] ss:$16 sps:$4 sm:$0xff]   ;;  %v2365_v6 = vld [vmem:[#allocation9 + $0xe8] ss:$16 sps:$4 sm:$0xff]   ;;  %v2366_v7 = vld [vmem:[#allocation9 + $0xc4] ss:$16 sps:$4 sm:$0xff]   ;;  %s3138_s18 = scalar_lea.hbm %s3195_s6, %s2269_s13 }
  0x5d   : > { %569 = vmatprep.subr.bf16.mxu0 %v2360_v2  ;;  %622 = vmatprep.subr.bf16.mxu1 %v2362_v3  ;;  %v2368_v8 = vld [vmem:[#allocation9 + $0xcc] ss:$16 sps:$4 sm:$0xff]   ;;  %v2370_v9 = vld [vmem:[#allocation9 + $0xc0] ss:$16 sps:$4 sm:$0xff]   ;;  %v2371_v10 = vld [vmem:[#allocation9 + $0xc8] ss:$16 sps:$4 sm:$0xff]  }
  0x5e   : > { %570 = vmatpush1.bf16.msra.mxu0 %v2364_v5  ;;  %623 = vmatpush1.bf16.msra.mxu1 %v2365_v6  ;;  %v2372_v11 = vld [vmem:[#allocation9 + $0xa4] ss:$16 sps:$4 sm:$0xff]   ;;  %v2374_v12 = vld [vmem:[#allocation9 + $0xac] ss:$16 sps:$4 sm:$0xff]   ;;  %v2376_v13 = vld [vmem:[#allocation9 + $0xa0] ss:$16 sps:$4 sm:$0xff]  }
  0x5f   : > { %571 = vmatprep.subr.bf16.mxu0 %v2366_v7  ;;  %624 = vmatprep.subr.bf16.mxu1 %v2368_v8  ;;  %v2377_v14 = vld [vmem:[#allocation9 + $0xa8] ss:$16 sps:$4 sm:$0xff]   ;;  %v2378_v15 = vld [vmem:[#allocation9 + $0x84] ss:$16 sps:$4 sm:$0xff]   ;;  %v2380_v16 = vld [vmem:[#allocation9 + $0x8c] ss:$16 sps:$4 sm:$0xff]   ;;  %v377_v8 = vlaneseq }
  0x60   : > { %v2382_v17 = vld [vmem:[#allocation9 + $0x80] ss:$16 sps:$4 sm:$0xff]   ;;  %v2383_v18 = vld [vmem:[#allocation9 + $0x88] ss:$16 sps:$4 sm:$0xff]   ;;  %v2384_v19 = vld [vmem:[#allocation9 + $0x64] ss:$16 sps:$4 sm:$0xff]  }
  0x61   : > { %v2386_v20 = vld [vmem:[#allocation9 + $0x6c] ss:$16 sps:$4 sm:$0xff]   ;;  %v2388_v21 = vld [vmem:[#allocation9 + $0x60] ss:$16 sps:$4 sm:$0xff]   ;;  %v2389_v22 = vld [vmem:[#allocation9 + $0x68] ss:$16 sps:$4 sm:$0xff]  }
  0x62   : > { %572 = vmatpush1.bf16.msra.mxu0 %v2370_v9  ;;  %625 = vmatpush1.bf16.msra.mxu1 %v2371_v10  ;;  %v2390_v23 = vld [vmem:[#allocation9 + $0x44] ss:$16 sps:$4 sm:$0xff]   ;;  %v2392_v24 = vld [vmem:[#allocation9 + $0x4c] ss:$16 sps:$4 sm:$0xff]   ;;  %v2394_v25 = vld [vmem:[#allocation9 + $0x40] ss:$16 sps:$4 sm:$0xff]  }
  0x63   : > { %573 = vmatprep.subr.bf16.mxu0 %v2372_v11  ;;  %626 = vmatprep.subr.bf16.mxu1 %v2374_v12  ;;  %v2395_v26 = vld [vmem:[#allocation9 + $0x48] ss:$16 sps:$4 sm:$0xff]   ;;  %v2396_v27 = vld [vmem:[#allocation9 + $0x24] ss:$16 sps:$4 sm:$0xff]   ;;  %v2398_v28 = vld [vmem:[#allocation9 + $0x2c] ss:$16 sps:$4 sm:$0xff]  }
  0x64   : > { %v2400_v29 = vld [vmem:[#allocation9 + $0x20] ss:$16 sps:$4 sm:$0xff]   ;;  %v2401_v30 = vld [vmem:[#allocation9 + $0x28] ss:$16 sps:$4 sm:$0xff]   ;;  %v2402_v31 = vld [vmem:[#allocation9 + $0x4] ss:$16 sps:$4 sm:$0xff]  }
  0x65   : > { %v2404_v32 = vld [vmem:[#allocation9 + $0xc] ss:$16 sps:$4 sm:$0xff]   ;;  %v2406_v33 = vld [vmem:[#allocation9] ss:$16 sps:$4 sm:$0xff]   ;;  %v2407_v34 = vld [vmem:[#allocation9 + $0x8] ss:$16 sps:$4 sm:$0xff]  }
  0x66   : > { %574 = vmatpush1.bf16.msra.mxu0 %v2376_v13  ;;  %627 = vmatpush1.bf16.msra.mxu1 %v2377_v14  ;;  %v2881_v35 = vld [vmem:[#allocation11 + $0xe4] ss:$16 sps:$4 sm:$0xff]   ;;  %v2883_v36 = vld [vmem:[#allocation11 + $0xec] ss:$16 sps:$4 sm:$0xff]   ;;  %v2886_v38 = vld [vmem:[#allocation11 + $0xe0] ss:$16 sps:$4 sm:$0xff]  }
  0x67   : > { %575 = vmatprep.subr.bf16.mxu0 %v2378_v15  ;;  %628 = vmatprep.subr.bf16.mxu1 %v2380_v16  ;;  %v2408_v37 = vld [vmem:[%s2860_s27] sm:$0xff]   ;;  %v2888_v39 = vld [vmem:[#allocation11 + $0xe8] ss:$16 sps:$4 sm:$0xff]   ;;  %v2894_v41 = vld [vmem:[#allocation11 + $0xcc] ss:$16 sps:$4 sm:$0xff]   ;;  %v378_v9 = vshrl.u32 %v377_v8, 7 }
  0x68   : > { %v2890_v40 = vld [vmem:[#allocation11 + $0xc4] ss:$16 sps:$4 sm:$0xff]   ;;  %v2896_v42 = vld [vmem:[#allocation11 + $0xc0] ss:$16 sps:$4 sm:$0xff]   ;;  %v2900_v43 = vld [vmem:[#allocation11 + $0xc8] ss:$16 sps:$4 sm:$0xff]  }
  0x69   : > { %v2904_v44 = vld [vmem:[#allocation11 + $0xa4] ss:$16 sps:$4 sm:$0xff]   ;;  %v2906_v45 = vld [vmem:[#allocation11 + $0xac] ss:$16 sps:$4 sm:$0xff]   ;;  %v2913_v47 = vld [vmem:[#allocation11 + $0xa0] ss:$16 sps:$4 sm:$0xff]  }
  0x6a   : > { %576 = vmatpush1.bf16.msra.mxu0 %v2382_v17  ;;  %629 = vmatpush1.bf16.msra.mxu1 %v2383_v18  ;;  %v2439_v46 = vld [vmem:[%s2860_s27 + $0x8] sm:$0xff]   ;;  %v2919_v49 = vld [vmem:[#allocation11 + $0x84] ss:$16 sps:$4 sm:$0xff]   ;;  %v2925_v51 = vld [vmem:[#allocation11 + $0x80] ss:$16 sps:$4 sm:$0xff]   ;;  %v387_v10 = vsub.s32 2, %v378_v9 }
  0x6b   : > { %577 = vmatprep.subr.bf16.mxu0 %v2384_v19  ;;  %630 = vmatprep.subr.bf16.mxu1 %v2386_v20  ;;  %v2915_v48 = vld [vmem:[#allocation11 + $0xa8] ss:$16 sps:$4 sm:$0xff]   ;;  %v2921_v50 = vld [vmem:[#allocation11 + $0x8c] ss:$16 sps:$4 sm:$0xff]   ;;  %v2931_v53 = vld [vmem:[#allocation11 + $0x64] ss:$16 sps:$4 sm:$0xff]  }
  0x6c   : > { %v2927_v52 = vld [vmem:[#allocation11 + $0x88] ss:$16 sps:$4 sm:$0xff]   ;;  %v2933_v54 = vld [vmem:[#allocation11 + $0x6c] ss:$16 sps:$4 sm:$0xff]   ;;  %v2939_v55 = vld [vmem:[#allocation11 + $0x60] ss:$16 sps:$4 sm:$0xff]  }
  0x6d   : > { %v2941_v56 = vld [vmem:[#allocation11 + $0x68] ss:$16 sps:$4 sm:$0xff]   ;;  %v2945_v57 = vld [vmem:[#allocation11 + $0x44] ss:$16 sps:$4 sm:$0xff]   ;;  %v2947_v58 = vld [vmem:[#allocation11 + $0x4c] ss:$16 sps:$4 sm:$0xff]  }
  0x6e   : > { %578 = vmatpush1.bf16.msra.mxu0 %v2388_v21  ;;  %631 = vmatpush1.bf16.msra.mxu1 %v2389_v22  ;;  %v2951_v59 = vld [vmem:[#allocation11 + $0x40] ss:$16 sps:$4 sm:$0xff]   ;;  %v2953_v60 = vld [vmem:[#allocation11 + $0x48] ss:$16 sps:$4 sm:$0xff]   ;;  %v2957_v61 = vld [vmem:[#allocation11 + $0x24] ss:$16 sps:$4 sm:$0xff]  }
  0x6f   : > { %579 = vmatprep.subr.bf16.mxu0 %v2390_v23  ;;  %632 = vmatprep.subr.bf16.mxu1 %v2392_v24  ;;  %v2959_v62 = vld [vmem:[#allocation11 + $0x2c] ss:$16 sps:$4 sm:$0xff]   ;;  %v2963_v63 = vld [vmem:[#allocation11 + $0x20] ss:$16 sps:$4 sm:$0xff]   ;;  %v2965_v0 = vld [vmem:[#allocation11 + $0x28] ss:$16 sps:$4 sm:$0xff]  }
  0x70   : > { %v2969_v1 = vld [vmem:[#allocation11 + $0x4] ss:$16 sps:$4 sm:$0xff]   ;;  %v2971_v2 = vld [vmem:[#allocation11 + $0xc] ss:$16 sps:$4 sm:$0xff]   ;;  %v2975_v3 = vld [vmem:[#allocation11] ss:$16 sps:$4 sm:$0xff]  }
  0x71   : > { %v2977_v5 = vld [vmem:[#allocation11 + $0x8] ss:$16 sps:$4 sm:$0xff]   ;;  %v691_v6 = vld [vmem:[#allocation2] sm:$0xff]  ;;  %v379_v11 = vsub.s32 0, %v378_v9  ;;  %v391_v12 = vsub.s32 3, %v378_v9  ;;  %v383_v16 = vsub.s32 1, %v378_v9 }
  0x72   : > { %580 = vmatpush1.bf16.msra.mxu0 %v2394_v25  ;;  %633 = vmatpush1.bf16.msra.mxu1 %v2395_v26  ;;  %v692_v7 = vpack.c.bf16 %v691_v6, %v691_v6  ;;  %v375_v13 = vld [vmem:[%s3192_s3] sm:$0xf]  ;;  %s1965_s11 = sshll.u32 %s2870_s1, 4  ;;  %s1951_s19 = scalar_lea.sflag [#allocation8], %s2856_s15  ;;  %s3140_s11 = int_to_ptr.vmem [resolvable:$true] %s1965_s11 }
  0x73   : > { %581 = vmatprep.subr.bf16.mxu0 %v2396_v27  ;;  %634 = vmatprep.subr.bf16.mxu1 %v2398_v28  ;;  %v388_v17 = vrot.slane %v375_v13, %v387_v10  ;;  %v380_v20 = vrot.slane %v375_v13, %v379_v11  ;;  %v392_v21 = vrot.slane %v375_v13, %v391_v12  ;;  %s2602_s2 = scalar_lea.vmem %s3140_s11, 256  ;;  %s2696_s24 = smov [#allocation12]  }
  0x74   : > { %v384_v24 = vrot.slane %v375_v13, %v383_v16  ;;  %p2603_p9 = scmp.ne.s32.totalorder %s3140_s11, %s2602_s2  ;;  %s2606_s27 = sshll.u32 %s2696_s24, 4  ;;  %s2607_s27 = int_to_ptr.vmem [resolvable:$false] %s2606_s27 }
  0x75   : > { %s2608_s9 = scalar_lea.vmem %s2607_s27, 512  ;;  %p2609_p13 = scmp.lt.s32.totalorder %s3140_s11, %s2607_s27 }
  0x76   : > { %582 = vmatpush1.bf16.msra.mxu0 %v2400_v29  ;;  %635 = vmatpush1.bf16.msra.mxu1 %v2401_v30  ;;  %p2604_p11 = pnand %p2603_p9, %p2829_p7  ;;  %p2610_p0 = scmp.lt.s32.totalorder %s2608_s9, %s2602_s2 }
  0x77   : > { %583 = vmatprep.subr.bf16.mxu0 %v2402_v31  ;;  %636 = vmatprep.subr.bf16.mxu1 %v2404_v32 }
  0x78   : > { %p2605_p2 = pneg %p2604_p11  ;;  %p2611_p5 = por %p2610_p0, %p2609_p13 }
  0x7a   : > { %584 = vmatpush1.bf16.msra.mxu0 %v2406_v33  ;;  %637 = vmatpush1.bf16.msra.mxu1 %v2407_v34  ;;  %p2612_p10 = pnand %p2611_p5, %p2605_p2 }
  0x7b   : > { %892 = vmatprep.subr.bf16.mxu0 %v2881_v35  ;;  %933 = vmatprep.subr.bf16.mxu1 %v2883_v36 }
  0x7d   : > { %602 = vmatmul.mubr.bf16.vlgmr.msra.gmra.mxu0 %v2408_v37  ;;  %655 = vmatmul.mubr.bf16.vlgmr.msra.gmra.mxu1 %v2408_v37 }
  0x7e   : > { %893 = vmatpush1.bf16.msra.mxu0 %v2886_v38  ;;  %934 = vmatpush1.bf16.msra.mxu1 %v2888_v39 }
  0x7f   : > { %894 = vmatprep.subr.bf16.mxu0 %v2890_v40  ;;  %935 = vmatprep.subr.bf16.mxu1 %v2894_v41 }
  0x80   : > { %611 = vmatprep.mubr.bf16.mxu0 %v3199_v4  ;;  %664 = vmatprep.mubr.bf16.mxu1 %v3199_v4 }
  0x82   : > { %895 = vmatpush1.bf16.msra.mxu0 %v2896_v42  ;;  %936 = vmatpush1.bf16.msra.mxu1 %v2900_v43 }
  0x83   : > { %896 = vmatprep.subr.bf16.mxu0 %v2904_v44  ;;  %937 = vmatprep.subr.bf16.mxu1 %v2906_v45 }
  0x85   : > { %612 = vmatmul.mubr.bf16.gmra.mxu0 %v2439_v46  ;;  %665 = vmatmul.mubr.bf16.gmra.mxu1 %v2439_v46 }
  0x86   : > { %897 = vmatpush1.bf16.msra.mxu0 %v2913_v47  ;;  %938 = vmatpush1.bf16.msra.mxu1 %v2915_v48 }
  0x87   : > { %898 = vmatprep.subr.bf16.mxu0 %v2919_v49  ;;  %939 = vmatprep.subr.bf16.mxu1 %v2921_v50 }
  0x88   : > { %924 = vmatprep.mubr.bf16.mxu0 %v3199_v4  ;;  %965 = vmatprep.mubr.bf16.mxu1 %v3199_v4 }
  0x8a   : > { %899 = vmatpush1.bf16.msra.mxu0 %v2925_v51  ;;  %940 = vmatpush1.bf16.msra.mxu1 %v2927_v52 }
  0x8b   : > { %900 = vmatprep.subr.bf16.mxu0 %v2931_v53  ;;  %941 = vmatprep.subr.bf16.mxu1 %v2933_v54 }
  0x8e   : > { %901 = vmatpush1.bf16.msra.mxu0 %v2939_v55  ;;  %942 = vmatpush1.bf16.msra.mxu1 %v2941_v56 }
  0x8f   : > { %902 = vmatprep.subr.bf16.mxu0 %v2945_v57  ;;  %943 = vmatprep.subr.bf16.mxu1 %v2947_v58 }
  0x92   : > { %903 = vmatpush1.bf16.msra.mxu0 %v2951_v59  ;;  %944 = vmatpush1.bf16.msra.mxu1 %v2953_v60 }
  0x93   : > { %904 = vmatprep.subr.bf16.mxu0 %v2957_v61  ;;  %945 = vmatprep.subr.bf16.mxu1 %v2959_v62 }
  0x96   : > { %905 = vmatpush1.bf16.msra.mxu0 %v2963_v63  ;;  %946 = vmatpush1.bf16.msra.mxu1 %v2965_v0 }
  0x97   : > { %906 = vmatprep.subr.bf16.mxu0 %v2969_v1  ;;  %947 = vmatprep.subr.bf16.mxu1 %v2971_v2 }
  0x9a   : > { %907 = vmatpush1.bf16.msra.mxu0 %v2975_v3  ;;  %948 = vmatpush1.bf16.msra.mxu1 %v2977_v5 }
  0x9b   : > { %1204 = vmatprep.subr.bf16.mxu0 %v2881_v35  ;;  %1245 = vmatprep.subr.bf16.mxu1 %v2883_v36 }
  0x9d   : > { %925 = vmatmul.mubr.bf16.vlgmr.msra.gmra.mxu0 %v692_v7  ;;  %966 = vmatmul.mubr.bf16.vlgmr.msra.gmra.mxu1 %v692_v7 }
  0x9e   : > { %1205 = vmatpush1.bf16.msra.mxu0 %v2886_v38  ;;  %1246 = vmatpush1.bf16.msra.mxu1 %v2888_v39 }
  0x9f   : > { %1206 = vmatprep.subr.bf16.mxu0 %v2890_v40  ;;  %1247 = vmatprep.subr.bf16.mxu1 %v2894_v41 }
  0xa0   : > { %1236 = vmatprep.mubr.bf16.mxu0 %v3199_v4  ;;  %1277 = vmatprep.mubr.bf16.mxu1 %v3199_v4 }
  0xa2   : > { %1207 = vmatpush1.bf16.msra.mxu0 %v2896_v42  ;;  %1248 = vmatpush1.bf16.msra.mxu1 %v2900_v43 }
  0xa3   : > { %1208 = vmatprep.subr.bf16.mxu0 %v2904_v44  ;;  %1249 = vmatprep.subr.bf16.mxu1 %v2906_v45 }
  0xa6   : > { %1209 = vmatpush1.bf16.msra.mxu0 %v2913_v47  ;;  %1250 = vmatpush1.bf16.msra.mxu1 %v2915_v48 }
  0xa7   : > { %1210 = vmatprep.subr.bf16.mxu0 %v2919_v49  ;;  %1251 = vmatprep.subr.bf16.mxu1 %v2921_v50 }
  0xaa   : > { %1211 = vmatpush1.bf16.msra.mxu0 %v2925_v51  ;;  %1252 = vmatpush1.bf16.msra.mxu1 %v2927_v52 }
  0xab   : > { %1212 = vmatprep.subr.bf16.mxu0 %v2931_v53  ;;  %1253 = vmatprep.subr.bf16.mxu1 %v2933_v54 }
  0xae   : > { %1213 = vmatpush1.bf16.msra.mxu0 %v2939_v55  ;;  %1254 = vmatpush1.bf16.msra.mxu1 %v2941_v56 }
  0xaf   : > { %1214 = vmatprep.subr.bf16.mxu0 %v2945_v57  ;;  %1255 = vmatprep.subr.bf16.mxu1 %v2947_v58 }
  0xb2   : > { %1215 = vmatpush1.bf16.msra.mxu0 %v2951_v59  ;;  %1256 = vmatpush1.bf16.msra.mxu1 %v2953_v60 }
  0xb3   : > { %1216 = vmatprep.subr.bf16.mxu0 %v2957_v61  ;;  %1257 = vmatprep.subr.bf16.mxu1 %v2959_v62 }
  0xb6   : > { %1217 = vmatpush1.bf16.msra.mxu0 %v2963_v63  ;;  %1258 = vmatpush1.bf16.msra.mxu1 %v2965_v0 }
  0xb7   : > { %1218 = vmatprep.subr.bf16.mxu0 %v2969_v1  ;;  %1259 = vmatprep.subr.bf16.mxu1 %v2971_v2 }
  0xba   : > { %1219 = vmatpush1.bf16.msra.mxu0 %v2975_v3  ;;  %1260 = vmatpush1.bf16.msra.mxu1 %v2977_v5 }
  0xbb   : > { %1517 = vmatprep.subr.bf16.mxu0 %v2881_v35  ;;  %1558 = vmatprep.subr.bf16.mxu1 %v2883_v36 }
 0x13d   : > { %v603_v14 = vpop.f32.mrf.mxu0  ;;  %v656_v15 = vpop.f32.mrf.mxu1 }
 0x13f   : > { %v605_v18 = vpop.f32.mrf.mxu0  ;;  %v658_v19 = vpop.f32.mrf.mxu1 }
 0x141   : > { %v607_v22 = vpop.f32.mrf.mxu0  ;;  %v660_v23 = vpop.f32.mrf.mxu1 }
 0x142   : > { %v3022_v25 = vadd.f32 %v607_v22, %v380_v20  ;;  %v3024_v26 = vadd.f32 %v660_v23, %v388_v17  ;;  %v604_v23 = vadd.f32 %v603_v14, %v380_v20 }
 0x143   : > { %v609_v27 = vpop.f32.mrf.mxu0  ;;  %v662_v28 = vpop.f32.mrf.mxu1 }
 0x144   : > { %v3026_v29 = vadd.f32 %v609_v27, %v384_v24  ;;  %v3028_v30 = vadd.f32 %v662_v28, %v392_v21 }
 0x145   : > { %v613_v31 = vpop.f32.mrf.mxu0  ;;  %v666_v32 = vpop.f32.mrf.mxu1 }
 0x146   : > { %v3030_v33 = vadd.f32 %v613_v31, %v380_v20  ;;  %v3032_v34 = vadd.f32 %v666_v32, %v388_v17  ;;  %v606_v31 = vadd.f32 %v605_v18, %v384_v24 }
 0x147   : > { %v615_v37 = vpop.f32.mrf.mxu0  ;;  %v668_v46 = vpop.f32.mrf.mxu1 }
 0x148   : > { %3215 = vst [vmem:[#allocation16_spill] sm:$0xff] %v3032_v34  ;;  %v3034_v6 = vadd.f32 %v615_v37, %v384_v24  ;;  %v3036_v7 = vadd.f32 %v668_v46, %v392_v21 }
 0x149   : > { %v617_v8 = vpop.f32.mrf.mxu0  ;;  %v670_v9 = vpop.f32.mrf.mxu1 }
 0x14a   : > { %3216 = vst [vmem:[#allocation17_spill] sm:$0xff] %v3034_v6  ;;  %3217 = vst [vmem:[#allocation18_spill] sm:$0xff] %v3036_v7  ;;  %v3038_v10 = vadd.f32 %v617_v8, %v380_v20  ;;  %v3040_v11 = vadd.f32 %v670_v9, %v388_v17 }
 0x14b   : > { %v619_v12 = vpop.f32.mrf.mxu0  ;;  %v672_v13 = vpop.f32.mrf.mxu1 }
 0x14c   : > { %3218 = vst [vmem:[#allocation19_spill] sm:$0xff] %v3038_v10  ;;  %3219 = vst [vmem:[#allocation20_spill] sm:$0xff] %v3040_v11  ;;  %v3042_v16 = vadd.f32 %v619_v12, %v384_v24  ;;  %v3044_v22 = vadd.f32 %v672_v13, %v392_v21  ;;  %v659_v12 = vadd.f32 %v658_v19, %v392_v21 }
 0x14d   : > { %v657_v13 = vadd.f32 %v656_v15, %v388_v17 }
 0x14e   : > { %3220 = vst [vmem:[#allocation21_spill] sm:$0xff] %v3042_v16  ;;  %3221 = vst [vmem:[#allocation22_spill] sm:$0xff] %v3044_v22 }
 0x15d   : > { %v926_v27 = vpop.f32.mrf.mxu0  ;;  %v967_v28 = vpop.f32.mrf.mxu1 }
 0x15e   : > { %v927_v32 = vadd.f32 %v926_v27, %v604_v23  ;;  %v968_v20 = vadd.f32 %v967_v28, %v657_v13 }
 0x15f   : > { %v928_v37 = vpop.f32.mrf.mxu0  ;;  %v969_v46 = vpop.f32.mrf.mxu1 }
 0x160   : > { %v2155_v4 = vmul.f32 -1.442695, %v927_v32  ;;  %v929_v34 = vadd.f32 %v928_v37, %v606_v31  ;;  %v970_v16 = vadd.f32 %v969_v46, %v659_v12 }
 0x161   : > { %v930_v7 = vpop.f32.mrf.mxu0  ;;  %v971_v8 = vpop.f32.mrf.mxu1 }
 0x162   : > { %2458 = vpow2.f32 %v2155_v4  ;;  %v2156_v9 = vmul.f32 -1.442695, %v929_v34  ;;  %v2157_v22 = vmul.f32 -1.442695, %v970_v16  ;;  %v993_v4 = vld [vmem:[#allocation3] sm:$0xff] }
 0x163   : > { %v931_v11 = vpop.f32.mrf.mxu0  ;;  %v972_v10 = vpop.f32.mrf.mxu1 }
 0x164   : > { %2460 = vpow2.f32 %v2156_v9 }
 0x165   : > { %2462 = vpow2.f32 %v2157_v22  ;;  %v3222_v22 = vmov 0  }
 0x16f   : > { %v2459_v14 = vpop.eup %2458 }
 0x170   : > { %v977_v6 = vadd.f32 1.0, %v2459_v14 }
 0x171   : > { %v2461_v18 = vpop.eup %2460 }
 0x172   : > { %2464 = vrcp.f32 %v977_v6  ;;  %v983_v24 = vadd.f32 1.0, %v2461_v18  ;;  %v2463_v7 = vpop.eup %2462 }
 0x173   : > { %2466 = vtanh.f32 %v968_v20  ;;  %v990_v10 = vadd.f32 1.0, %v2463_v7 }
 0x174   : > { %2468 = vrcp.f32 %v983_v24 }
 0x175   : > { %2470 = vrcp.f32 %v990_v10 }
 0x17f   : > { %v2465_v23 = vpop.eup %2464 }
 0x180   : > { %v2467_v34 = vpop.eup %2466 }
 0x181   : > { %v2469_v11 = vpop.eup %2468  ;;  %v995_v27 = vmul.f32 %v2467_v34, %v2465_v23 }
 0x182   : > { %v994_v19 = vmul.f32 %v2469_v11, %v993_v4  ;;  %v2471_v15 = vpop.eup %2470 }
 0x184   : > { %v3046_v21 = vadd.f32 %v995_v27, %v994_v19 }
 0x186   : > { %2472 = vtanh.f32 %v3046_v21 }
 0x193   : > { %v2473_v17 = vpop.eup %2472 }
 0x194   : > { %v998_v16 = vmul.f32 %v2473_v17, %v2471_v15 }
 0x196   : > { %v1001_v6 = vpack.c.bf16 %v998_v16, %v998_v16 }
 0x198   : > { %1002 = vst [vmem:[#allocation5] sm:$0xf] %v1001_v6  ;;  %1237 = vmatmul.mubr.bf16.vlgmr.msra.gmra.mxu0 %v1001_v6  ;;  %1278 = vmatmul.mubr.bf16.vlgmr.msra.gmra.mxu1 %v1001_v6 }
 0x199   : > { %1518 = vmatpush1.bf16.msra.mxu0 %v2886_v38  ;;  %1559 = vmatpush1.bf16.msra.mxu1 %v2888_v39 }
 0x19a   : > { %1519 = vmatprep.subr.bf16.mxu0 %v2890_v40  ;;  %1560 = vmatprep.subr.bf16.mxu1 %v2894_v41 }
 0x19b   : > { %1549 = vmatprep.mubr.bf16.mxu0 %v3222_v22  ;;  %1590 = vmatprep.mubr.bf16.mxu1 %v3222_v22 }
 0x19d   : > { %1520 = vmatpush1.bf16.msra.mxu0 %v2896_v42  ;;  %1561 = vmatpush1.bf16.msra.mxu1 %v2900_v43 }
 0x19e   : > { %1521 = vmatprep.subr.bf16.mxu0 %v2904_v44  ;;  %1562 = vmatprep.subr.bf16.mxu1 %v2906_v45 }
 0x1a1   : > { %1522 = vmatpush1.bf16.msra.mxu0 %v2913_v47  ;;  %1563 = vmatpush1.bf16.msra.mxu1 %v2915_v48 }
 0x1a2   : > { %1523 = vmatprep.subr.bf16.mxu0 %v2919_v49  ;;  %1564 = vmatprep.subr.bf16.mxu1 %v2921_v50 }
 0x1a5   : > { %1524 = vmatpush1.bf16.msra.mxu0 %v2925_v51  ;;  %1565 = vmatpush1.bf16.msra.mxu1 %v2927_v52 }
 0x1a6   : > { %1525 = vmatprep.subr.bf16.mxu0 %v2931_v53  ;;  %1566 = vmatprep.subr.bf16.mxu1 %v2933_v54 }
 0x1a9   : > { %1526 = vmatpush1.bf16.msra.mxu0 %v2939_v55  ;;  %1567 = vmatpush1.bf16.msra.mxu1 %v2941_v56 }
 0x1aa   : > { %1527 = vmatprep.subr.bf16.mxu0 %v2945_v57  ;;  %1568 = vmatprep.subr.bf16.mxu1 %v2947_v58 }
 0x1ad   : > { %1528 = vmatpush1.bf16.msra.mxu0 %v2951_v59  ;;  %1569 = vmatpush1.bf16.msra.mxu1 %v2953_v60 }
 0x1ae   : > { %1529 = vmatprep.subr.bf16.mxu0 %v2957_v61  ;;  %1570 = vmatprep.subr.bf16.mxu1 %v2959_v62 }
 0x1b1   : > { %1530 = vmatpush1.bf16.msra.mxu0 %v2963_v63  ;;  %1571 = vmatpush1.bf16.msra.mxu1 %v2965_v0 }
 0x1b2   : > { %1531 = vmatprep.subr.bf16.mxu0 %v2969_v1  ;;  %1572 = vmatprep.subr.bf16.mxu1 %v2971_v2 }
 0x1b5   : > { %1532 = vmatpush1.bf16.msra.mxu0 %v2975_v3  ;;  %1573 = vmatpush1.bf16.msra.mxu1 %v2977_v5 }
 0x1b6   : > { %1830 = vmatprep.subr.bf16.mxu0 %v2881_v35  ;;  %1871 = vmatprep.subr.bf16.mxu1 %v2883_v36 }
 0x258   : > { %v1238_v28 = vpop.f32.mrf.mxu0  ;;  %v1279_v31 = vpop.f32.mrf.mxu1 }
 0x259   : > { %v1239_v32 = vadd.f32 %v1238_v28, %v3022_v25  ;;  %v1280_v36 = vadd.f32 %v1279_v31, %v3024_v26 }
 0x25a   : > { %v1240_v37 = vpop.f32.mrf.mxu0  ;;  %v1281_v46 = vpop.f32.mrf.mxu1 }
 0x25b   : > { %v2190_v8 = vmul.f32 -1.442695, %v1239_v32  ;;  %v1241_v9 = vadd.f32 %v1240_v37, %v3026_v29  ;;  %v1282_v35 = vadd.f32 %v1281_v46, %v3028_v30  ;;  %v3226_v46 = vld [vmem:[#allocation19_spill] sm:$0xff] }
 0x25c   : > { %v1242_v12 = vpop.f32.mrf.mxu0  ;;  %v1283_v13 = vpop.f32.mrf.mxu1 }
 0x25d   : > { %2474 = vpow2.f32 %v2190_v8  ;;  %v2191_v14 = vmul.f32 -1.442695, %v1241_v9  ;;  %v2192_v24 = vmul.f32 -1.442695, %v1282_v35 }
 0x25e   : > { %v1243_v20 = vpop.f32.mrf.mxu0  ;;  %v1284_v18 = vpop.f32.mrf.mxu1 }
 0x25f   : > { %2476 = vpow2.f32 %v2191_v14  ;;  %v3227_v14 = vld [vmem:[#allocation21_spill] sm:$0xff] }
 0x260   : > { %2478 = vtanh.f32 %v1280_v36 }
 0x261   : > { %2480 = vpow2.f32 %v2192_v24 }
 0x26a   : > { %v2475_v7 = vpop.eup %2474 }
 0x26b   : > { %v1289_v23 = vadd.f32 1.0, %v2475_v7 }
 0x26c   : > { %v2477_v25 = vpop.eup %2476 }
 0x26d   : > { %2482 = vrcp.f32 %v1289_v23  ;;  %v1295_v4 = vadd.f32 1.0, %v2477_v25  ;;  %v2479_v29 = vpop.eup %2478  ;;  %v3228_v23 = vld [vmem:[#allocation22_spill] sm:$0xff] }
 0x26e   : > { %v2481_v34 = vpop.eup %2480 }
 0x26f   : > { %2484 = vrcp.f32 %v1295_v4  ;;  %v1302_v19 = vadd.f32 1.0, %v2481_v34  ;;  %v3229_v4 = vld [vmem:[#allocation20_spill] sm:$0xff] }
 0x271   : > { %2486 = vrcp.f32 %v1302_v19 }
 0x27a   : > { %v2483_v11 = vpop.eup %2482 }
 0x27b   : > { %v1307_v10 = vmul.f32 %v2483_v11, %v2479_v29 }
 0x27c   : > { %v2485_v27 = vpop.eup %2484 }
 0x27d   : > { %v1306_v15 = vmul.f32 %v2485_v27, %v3046_v21 }
 0x27e   : > { %v2487_v26 = vpop.eup %2486 }
 0x27f   : > { %v3088_v30 = vadd.f32 %v1307_v10, %v1306_v15 }
 0x281   : > { %2488 = vtanh.f32 %v3088_v30 }
 0x28e   : > { %v2489_v17 = vpop.eup %2488 }
 0x28f   : > { %v1310_v16 = vmul.f32 %v2489_v17, %v2487_v26 }
 0x291   : > { %v1313_v6 = vpack.c.bf16 %v1310_v16, %v1310_v16 }
 0x293   : > { %1315 = vst [vmem:[#allocation5 + $0x4] sm:$0xf] %v1313_v6  ;;  %1550 = vmatmul.mubr.bf16.vlgmr.msra.gmra.mxu0 %v1313_v6  ;;  %1591 = vmatmul.mubr.bf16.vlgmr.msra.gmra.mxu1 %v1313_v6 }
 0x294   : > { %1831 = vmatpush1.bf16.msra.mxu0 %v2886_v38  ;;  %1872 = vmatpush1.bf16.msra.mxu1 %v2888_v39 }
 0x295   : > { %1832 = vmatprep.subr.bf16.mxu0 %v2890_v40  ;;  %1873 = vmatprep.subr.bf16.mxu1 %v2894_v41 }
 0x296   : > { %1862 = vmatprep.mubr.bf16.mxu0 %v3222_v22  ;;  %1903 = vmatprep.mubr.bf16.mxu1 %v3222_v22 }
 0x298   : > { %1833 = vmatpush1.bf16.msra.mxu0 %v2896_v42  ;;  %1874 = vmatpush1.bf16.msra.mxu1 %v2900_v43 }
 0x299   : > { %1834 = vmatprep.subr.bf16.mxu0 %v2904_v44  ;;  %1875 = vmatprep.subr.bf16.mxu1 %v2906_v45  ;;  %v3223_v44 = vld [vmem:[#allocation17_spill] sm:$0xff] }
 0x29a   : > { %v1942_v21 = vld [vmem:[#allocation5] sm:$0xff]  }
 0x29b   : > { %1946 = vst [vmem:[%s2870_s1] sm:$0xff] %v1942_v21  }
 0x29c   : > { %1835 = vmatpush1.bf16.msra.mxu0 %v2913_v47  ;;  %1876 = vmatpush1.bf16.msra.mxu1 %v2915_v48 }
 0x29d   : > { %1836 = vmatprep.subr.bf16.mxu0 %v2919_v49  ;;  %1877 = vmatprep.subr.bf16.mxu1 %v2921_v50 }
 0x2a0   : > { %1837 = vmatpush1.bf16.msra.mxu0 %v2925_v51  ;;  %1878 = vmatpush1.bf16.msra.mxu1 %v2927_v52  ;;  %v3224_v52 = vld [vmem:[#allocation18_spill] sm:$0xff] }
 0x2a1   : > { %1838 = vmatprep.subr.bf16.mxu0 %v2931_v53  ;;  %1879 = vmatprep.subr.bf16.mxu1 %v2933_v54  ;;  %v3225_v54 = vld [vmem:[#allocation16_spill] sm:$0xff] }
 0x2a4   : > { %1839 = vmatpush1.bf16.msra.mxu0 %v2939_v55  ;;  %1880 = vmatpush1.bf16.msra.mxu1 %v2941_v56 }
 0x2a5   : > { %1840 = vmatprep.subr.bf16.mxu0 %v2945_v57  ;;  %1881 = vmatprep.subr.bf16.mxu1 %v2947_v58 }
 0x2a8   : > { %1841 = vmatpush1.bf16.msra.mxu0 %v2951_v59  ;;  %1882 = vmatpush1.bf16.msra.mxu1 %v2953_v60 }
 0x2a9   : > { %1842 = vmatprep.subr.bf16.mxu0 %v2957_v61  ;;  %1883 = vmatprep.subr.bf16.mxu1 %v2959_v62 }
 0x2ac   : > { %1843 = vmatpush1.bf16.msra.mxu0 %v2963_v63  ;;  %1884 = vmatpush1.bf16.msra.mxu1 %v2965_v0 }
 0x2ad   : > { %1844 = vmatprep.subr.bf16.mxu0 %v2969_v1  ;;  %1885 = vmatprep.subr.bf16.mxu1 %v2971_v2 }
 0x2b0   : > { %1845 = vmatpush1.bf16.msra.mxu0 %v2975_v3  ;;  %1886 = vmatpush1.bf16.msra.mxu1 %v2977_v5 }
 0x353   : > { %v1551_v38 = vpop.f32.mrf.mxu0  ;;  %v1592_v39 = vpop.f32.mrf.mxu1 }
 0x354   : > { %v1552_v40 = vadd.f32 %v1551_v38, %v3030_v33  ;;  %v1593_v55 = vadd.f32 %v1592_v39, %v3225_v54 }
 0x355   : > { %v1553_v41 = vpop.f32.mrf.mxu0  ;;  %v1594_v42 = vpop.f32.mrf.mxu1 }
 0x356   : > { %v2225_v43 = vmul.f32 -1.442695, %v1552_v40  ;;  %v1554_v45 = vadd.f32 %v1553_v41, %v3223_v44  ;;  %v1595_v53 = vadd.f32 %v1594_v42, %v3224_v52 }
 0x357   : > { %v1555_v47 = vpop.f32.mrf.mxu0  ;;  %v1596_v48 = vpop.f32.mrf.mxu1 }
 0x358   : > { %2490 = vpow2.f32 %v2225_v43  ;;  %v2226_v49 = vmul.f32 -1.442695, %v1554_v45  ;;  %v2227_v56 = vmul.f32 -1.442695, %v1595_v53 }
 0x359   : > { %v1556_v50 = vpop.f32.mrf.mxu0  ;;  %v1597_v51 = vpop.f32.mrf.mxu1 }
 0x35a   : > { %2492 = vpow2.f32 %v2226_v49 }
 0x35b   : > { %2494 = vtanh.f32 %v1593_v55 }
 0x35c   : > { %2496 = vpow2.f32 %v2227_v56 }
 0x365   : > { %v2491_v57 = vpop.eup %2490 }
 0x366   : > { %v1602_v58 = vadd.f32 1.0, %v2491_v57 }
 0x367   : > { %v2493_v59 = vpop.eup %2492 }
 0x368   : > { %2498 = vrcp.f32 %v1602_v58  ;;  %v1608_v60 = vadd.f32 1.0, %v2493_v59  ;;  %v2495_v61 = vpop.eup %2494 }
 0x369   : > { %v2497_v62 = vpop.eup %2496 }
 0x36a   : > { %2500 = vrcp.f32 %v1608_v60  ;;  %v1615_v2 = vadd.f32 1.0, %v2497_v62 }
 0x36c   : > { %2502 = vrcp.f32 %v1615_v2 }
 0x375   : > { %v2499_v63 = vpop.eup %2498 }
 0x376   : > { %v1620_v0 = vmul.f32 %v2499_v63, %v2495_v61 }
 0x377   : > { %v2501_v1 = vpop.eup %2500 }
 0x378   : > { %v1619_v3 = vmul.f32 %v2501_v1, %v3088_v30 }
 0x379   : > { %v2503_v33 = vpop.eup %2502 }
 0x37a   : > { %v1621_v5 = vadd.f32 %v1620_v0, %v1619_v3 }
 0x37c   : > { %2504 = vtanh.f32 %v1621_v5 }
 0x389   : > { %v2505_v22 = vpop.eup %2504 }
 0x38a   : > { %v1623_v28 = vmul.f32 %v2505_v22, %v2503_v33 }
 0x38c   : > { %v1626_v31 = vpack.c.bf16 %v1623_v28, %v1623_v28 }
 0x38e   : > { %1628 = vst [vmem:[#allocation5 + $0x8] sm:$0xf] %v1626_v31  ;;  %1863 = vmatmul.mubr.bf16.vlgmr.msra.gmra.mxu0 %v1626_v31  ;;  %1904 = vmatmul.mubr.bf16.vlgmr.msra.gmra.mxu1 %v1626_v31 }
 0x44e   : > { %v1864_v32 = vpop.f32.mrf.mxu0  ;;  %v1905_v37 = vpop.f32.mrf.mxu1 }
 0x44f   : > { %v1865_v8 = vadd.f32 %v1864_v32, %v3226_v46  ;;  %v1906_v29 = vadd.f32 %v1905_v37, %v3229_v4 }
 0x450   : > { %v1866_v9 = vpop.f32.mrf.mxu0  ;;  %v1907_v12 = vpop.f32.mrf.mxu1 }
 0x451   : > { %v2260_v13 = vmul.f32 -1.442695, %v1865_v8  ;;  %v1867_v20 = vadd.f32 %v1866_v9, %v3227_v14  ;;  %v1908_v25 = vadd.f32 %v1907_v12, %v3228_v23 }
 0x452   : > { %v1868_v18 = vpop.f32.mrf.mxu0  ;;  %v1909_v35 = vpop.f32.mrf.mxu1 }
 0x453   : > { %2506 = vpow2.f32 %v2260_v13  ;;  %v2261_v36 = vmul.f32 -1.442695, %v1867_v20  ;;  %v2262_v34 = vmul.f32 -1.442695, %v1908_v25 }
 0x454   : > { %v1869_v24 = vpop.f32.mrf.mxu0  ;;  %v1910_v7 = vpop.f32.mrf.mxu1 }
 0x455   : > { %2508 = vpow2.f32 %v2261_v36 }
 0x456   : > { %2510 = vtanh.f32 %v1906_v29 }
 0x457   : > { %2512 = vpow2.f32 %v2262_v34 }
 0x460   : > { %v2507_v11 = vpop.eup %2506 }
 0x461   : > { %v1915_v10 = vadd.f32 1.0, %v2507_v11 }
 0x462   : > { %v2509_v27 = vpop.eup %2508 }
 0x463   : > { %2514 = vrcp.f32 %v1915_v10  ;;  %v1921_v19 = vadd.f32 1.0, %v2509_v27  ;;  %v2511_v15 = vpop.eup %2510 }
 0x464   : > { %v2513_v30 = vpop.eup %2512 }
 0x465   : > { %2516 = vrcp.f32 %v1921_v19  ;;  %v1928_v6 = vadd.f32 1.0, %v2513_v30 }
 0x467   : > { %2518 = vrcp.f32 %v1928_v6 }
 0x470   : > { %v2515_v26 = vpop.eup %2514 }
 0x471   : > { %v1933_v17 = vmul.f32 %v2515_v26, %v2511_v15 }
 0x472   : > { %v2517_v16 = vpop.eup %2516 }
 0x473   : > { %v1932_v21 = vmul.f32 %v2517_v16, %v1621_v5 }
 0x474   : > { %v2519_v39 = vpop.eup %2518 }
 0x475   : > { %v1934_v38 = vadd.f32 %v1933_v17, %v1932_v21 }
 0x477   : > { %2520 = vtanh.f32 %v1934_v38  ;;  %1937 = vst [vmem:[#allocation3] sm:$0xff] %v1934_v38 }
 0x484   : > { %v2521_v40 = vpop.eup %2520 }
 0x485   : > { %v1936_v41 = vmul.f32 %v2521_v40, %v2519_v39 }
 0x487   : > { %1938 = vst [vmem:[#allocation2] sm:$0xff] %v1936_v41  ;;  %v1939_v42 = vpack.c.bf16 %v1936_v41, %v1936_v41 }
 0x489   : > { %1941 = vst [vmem:[#allocation5 + $0xc] sm:$0xf] %v1939_v42 }
 0x490   : > { %v1944_v43 = vld [vmem:[#allocation5 + $0x8] sm:$0xff]  }
 0x491   : > { %1948 = vst [vmem:[%s2870_s1 + $0x8] sm:$0xff] %v1944_v43  }
 0x492   : > { %2615 = shalt.err (!%p2612_p10)
}
 0x493   : > { %s2616_s1 = scalar_lea.hbm %s3138_s18, 256  ;;  %s2620_s30 = scalar_lea.hbm %s3195_s6, 512 }
 0x494   : > { %p2617_p1 = scmp.ne.s32.totalorder %s3138_s18, %s2616_s1  ;;  %p2621_p12 = scmp.lt.s32.totalorder %s3138_s18, %s3195_s6 }
 0x495   : > { %p2622_p3 = scmp.lt.s32.totalorder %s2620_s30, %s2616_s1 }
 0x496   : > { %p2618_p4 = pnand %p2617_p1, %p2829_p7 }
 0x497   : > { %p2623_p8 = por %p2622_p3, %p2621_p12 }
 0x498   : > { %p2619_p6 = pneg %p2618_p4 }
 0x49a   : > { %p2624_p9 = pnand %p2623_p8, %p2619_p6 }
 0x49c   : > { %2627 = shalt.err (!%p2624_p9)
}
 0x49d   : > { %s2697_s13 = smov 64   ;;  %s2698_s16 = smov 4  }
 0x49e   : > { %2280 = dma.vmem_to_hbm [thread:$0]  (%p2829_p7), %s3140_s11, 256, %s3138_s18, %s1951_s19, %s2697_s13, %s2697_s13, %s2698_s16  }
 0x49f PF: > { %s1980_s14 = sand.u32 1, %s2666_s21   ;;  %p3230_p11 = scmp.ne.s32.totalorder %s3206_s8, 0 }
 0x4a0   : > { %p3231_p2 = scmp.ge.s32.totalorder %s2686_s26, 2  ;;  %s1981_s2 = scalar_lea.sflag [#allocation8], %s1980_s14 }
 0x4a2   : > { %p2294_p13 = pnand %p3231_p2, %p3230_p11 }
 0x4a4   : > { %p2295_p0 = pneg %p2294_p13 }
 0x4a6   : > { %2661 = dma.done.wait (%p2295_p0), %s1981_s2, 256  }
 0x4a7   : > { %2663 = vsyncadd (%p2295_p0), %s1981_s2, 4294967040  ;;  %s23_s26 = sadd.s32 1, %s2686_s26   ;;  %s3232_s21 = smov %s2670_s22 }
 0x4a8   : > { %p20_p5 = scmp.ge.s32.totalorder %s23_s26, 4   ;;  %s3233_s22 = smov %s2674_s23 }
 0x4a9   : > { %s3234_s23 = smov %s2838_s17  ;;  %s3235_s24 = smov %s2682_s25 }
 0x4aa   : > { %s3236_s25 = smov %s3238_s10  ;;  %22 = sbr.rel (!%p20_p5) target bundleno = 10 (0xa), region = 108 }
 0x4af   :  { %1986 = vsyncpa [#allocation7], 1 }
 0x4b0   :  { %1988 = vsyncpa [#allocation7 + $0x1], 1 }
 0x4b1   :  { %1989 = vsyncpa [#allocation10], 1 }
 0x4b2   :  { %1990 = vsyncpa [#allocation8], 1 }
 0x4b3   :  { %1992 = vsyncpa [#allocation8 + $0x1], 1 }

</bundles_post_ra>
